<compile_context>
chip_gen: v7x
topology: tpu7x:2x2x1
jax: 0.10.0
libtpu: 0.0.40
codegen_flags: <defaults>
</compile_context>

<pallas_src>
import functools
import math

import jax
import jax.numpy as jnp
from jax.experimental import pallas as pl
from jax.experimental.pallas import tpu as pltpu


# ----------------------------- helpers -------------------------------------

def _ln(x, g, b, eps):
    """LayerNorm over the last axis; x (rows, D) f32, g/b (1, D)."""
    mean = jnp.mean(x, axis=-1, keepdims=True)
    var = jnp.mean(jnp.square(x - mean), axis=-1, keepdims=True)
    return (x - mean) * jax.lax.rsqrt(var + eps) * g + b


# --------------------------- Pallas kernels --------------------------------

def _patch_embed_kernel(x_ref, w_ref, b_ref, cls_ref, pos_ref, o_ref, *, n_patches):
    """Patch matmul + cls-token + pos-embed + pad-to-8-rows, fused per batch."""
    x = x_ref[...].astype(jnp.bfloat16)                                # (N, CPP)
    tok = jnp.dot(x, w_ref[...], preferred_element_type=jnp.float32) + b_ref[...]
    pos = pos_ref[...]                                                  # (S_pad, D)
    o_ref[...] = jnp.zeros_like(o_ref)                                  # pad rows = 0
    o_ref[0:1, :] = (cls_ref[...] + pos[0:1, :]).astype(o_ref.dtype)
    o_ref[1:1 + n_patches, :] = (tok + pos[1:1 + n_patches, :]).astype(o_ref.dtype)


def patch_embed_tokens(patches, w, b, cls_tok, pos_pad):
    """patches (B, N, C*P*P) -> tokens (B, S_pad, D) with cls + pos fused in."""
    B, N, CPP = patches.shape
    D = w.shape[1]
    S_pad = pos_pad.shape[0]
    kernel = functools.partial(_patch_embed_kernel, n_patches=N)
    return pl.pallas_call(
        kernel,
        out_shape=jax.ShapeDtypeStruct((B, S_pad, D), jnp.float32),
        grid=(B,),
        in_specs=[pl.BlockSpec((None, N, CPP), lambda bi: (bi, 0, 0)),
                  pl.BlockSpec((CPP, D), lambda bi: (0, 0)),
                  pl.BlockSpec((1, D), lambda bi: (0, 0)),
                  pl.BlockSpec((1, D), lambda bi: (0, 0)),
                  pl.BlockSpec((S_pad, D), lambda bi: (0, 0))],
        out_specs=pl.BlockSpec((None, S_pad, D), lambda bi: (bi, 0, 0)),
        compiler_params=pltpu.CompilerParams(dimension_semantics=("parallel",)),
    )(patches, w, b.reshape(1, D), cls_tok, pos_pad)


def _vit_blocks_kernel(x_ref, qkvw_ref, qkvb_ref, projw_ref, vecs_ref,
                       fc1w_ref, fc1b_ref, fc2w_ref, o_ref,
                       *, nh, Dh, n_valid, eps):
    """One (batch, layer) grid step of the fused transformer stack.

    All stacked per-layer weights are VMEM-resident (constant index maps);
    the current layer is selected with pl.program_id(1).  The residual stream
    lives in the output block, resident in VMEM across the layer axis.
    """
    l = pl.program_id(1)

    @pl.when(l == 0)
    def _():
        o_ref[...] = x_ref[...]

    x = o_ref[...].astype(jnp.float32)                       # (S_pad, D)
    S_pad, D = x.shape

    vecs = vecs_ref[l]                                       # (6, D) packed vectors
    ln1_g, ln1_b = vecs[0:1, :], vecs[1:2, :]
    proj_b = vecs[2:3, :]
    ln2_g, ln2_b = vecs[3:4, :], vecs[4:5, :]
    fc2_b = vecs[5:6, :]

    # ---- attention branch (pre-norm): LN -> fused QKV -> per-head MHSA -> proj -> +res
    h = _ln(x, ln1_g, ln1_b, eps).astype(jnp.bfloat16)
    qkv = jnp.dot(h, qkvw_ref[l], preferred_element_type=jnp.float32) + qkvb_ref[l]
    # (S_pad, 3D); 1/sqrt(Dh) is folded into Wq at init time.

    key_mask = jax.lax.broadcasted_iota(jnp.int32, (S_pad, S_pad), 1) < n_valid
    proj_w = projw_ref[l]                                    # (D, D) bf16
    attn_out = jnp.zeros((S_pad, D), jnp.float32)
    # Static Python loop: nh is small and the (S_pad, S_pad) tiles are tiny,
    # so live ranges stay well within vregs.
    for head in range(nh):
        lo = head * Dh
        q_h = qkv[:, lo:lo + Dh]                             # (S_pad, Dh)
        k_h = qkv[:, D + lo:D + lo + Dh]
        v_h = qkv[:, 2 * D + lo:2 * D + lo + Dh]
        s = jax.lax.dot_general(q_h, k_h, (((1,), (1,)), ((), ())),
                                preferred_element_type=jnp.float32)   # (S_pad, S_pad)
        s = jnp.where(key_mask, s, -1e30)                    # mask padded key rows
        s = s - jnp.max(s, axis=-1, keepdims=True)
        p = jnp.exp(s)
        p = p * pl.reciprocal(jnp.sum(p, axis=-1, keepdims=True), approx=True)
        o_h = jnp.dot(p, v_h, preferred_element_type=jnp.float32)     # (S_pad, Dh)
        # Accumulate the output projection per head (no concat; same FLOPs).
        attn_out = attn_out + jnp.dot(o_h.astype(jnp.bfloat16),
                                      proj_w[lo:lo + Dh, :],
                                      preferred_element_type=jnp.float32)
    x = x + attn_out + proj_b

    # ---- MLP branch (pre-norm): LN -> fc1 + GELU -> fc2 -> +res
    h = _ln(x, ln2_g, ln2_b, eps).astype(jnp.bfloat16)
    h = jnp.dot(h, fc1w_ref[l], preferred_element_type=jnp.float32) + fc1b_ref[l]
    # TODO(synk): timm's nn.GELU is the exact erf GELU; tanh approximation used here.
    h = 0.5 * h * (1.0 + jnp.tanh(0.7978845608028654 *
                                  (h + 0.044715 * h * h * h)))
    x = x + jnp.dot(h.astype(jnp.bfloat16), fc2w_ref[l],
                    preferred_element_type=jnp.float32) + fc2_b

    o_ref[...] = x.astype(o_ref.dtype)


def transformer_blocks(x_tok, blk, *, nh, Dh, n_valid, eps=1e-6):
    """x_tok (B, S_pad, D); blk holds per-layer params stacked on a depth axis."""
    B, S_pad, D = x_tok.shape
    depth = blk["qkv_w"].shape[0]
    Dmlp = blk["fc1_w"].shape[-1]

    xmap = lambda b, l: (b, 0, 0)     # activation block: one per batch element
    wres = lambda b, l: (0, 0, 0)     # whole stacked parameter stays VMEM-resident

    kernel = functools.partial(_vit_blocks_kernel, nh=nh, Dh=Dh,
                               n_valid=n_valid, eps=eps)
    return pl.pallas_call(
        kernel,
        out_shape=jax.ShapeDtypeStruct((B, S_pad, D), jnp.float32),
        grid=(B, depth),
        in_specs=[
            pl.BlockSpec((None, S_pad, D), xmap),       # x (tokens + pos), layer-0 init
            pl.BlockSpec((depth, D, 3 * D), wres),      # fused qkv weight (bf16)
            pl.BlockSpec((depth, 1, 3 * D), wres),      # fused qkv bias
            pl.BlockSpec((depth, D, D), wres),          # proj weight (bf16)
            pl.BlockSpec((depth, 6, D), wres),          # packed (1,D) vectors
            pl.BlockSpec((depth, D, Dmlp), wres),       # fc1 weight (bf16)
            pl.BlockSpec((depth, 1, Dmlp), wres),       # fc1 bias
            pl.BlockSpec((depth, Dmlp, D), wres),       # fc2 weight (bf16)
        ],
        out_specs=pl.BlockSpec((None, S_pad, D), xmap),
        input_output_aliases={0: 0},                    # residual stream reuses x_tok's HBM
        compiler_params=pltpu.CompilerParams(
            dimension_semantics=("parallel", "arbitrary"),
            vmem_limit_bytes=32 * 1024 * 1024),         # explicit budget (v7x has 64 MiB)
    )(x_tok, blk["qkv_w"], blk["qkv_b"], blk["proj_w"], blk["vecs"],
      blk["fc1_w"], blk["fc1_b"], blk["fc2_w"])


def _final_head_kernel(x_ref, g_ref, b_ref, w_ref, hb_ref, o_ref, *, eps):
    x = x_ref[...].astype(jnp.float32)
    h = _ln(x, g_ref[...], b_ref[...], eps)
    acc = jnp.dot(h.astype(jnp.bfloat16), w_ref[...],
                  preferred_element_type=jnp.float32) + hb_ref[...]
    o_ref[...] = acc.astype(o_ref.dtype)


def final_norm_head(x_cls, g, b, head_w, head_b, eps=1e-6):
    """Fused final LayerNorm + classifier on the cls tokens only (B, D)."""
    B, D = x_cls.shape
    NC = head_w.shape[1]
    NCp = pl.cdiv(NC, 128) * 128                     # lane-dense class dim
    w_pad = jnp.pad(head_w, ((0, 0), (0, NCp - NC)))
    b_pad = jnp.pad(head_b, ((0, NCp - NC),)).reshape(1, NCp)
    kernel = functools.partial(_final_head_kernel, eps=eps)
    out = pl.pallas_call(
        kernel,
        out_shape=jax.ShapeDtypeStruct((B, NCp), jnp.float32),
        grid=(1,),
        in_specs=[pl.BlockSpec((B, D), lambda i: (0, 0)),
                  pl.BlockSpec((1, D), lambda i: (0, 0)),
                  pl.BlockSpec((1, D), lambda i: (0, 0)),
                  pl.BlockSpec((D, NCp), lambda i: (0, 0)),
                  pl.BlockSpec((1, NCp), lambda i: (0, 0))],
        out_specs=pl.BlockSpec((B, NCp), lambda i: (0, 0)),
        compiler_params=pltpu.CompilerParams(dimension_semantics=("arbitrary",)),
    )(x_cls, g.reshape(1, D), b.reshape(1, D), w_pad, b_pad)
    return out[:, :NC]


# --------------------------- ViT model (small) -----------------------------
# Same architecture as timm's vit_base_patch16_224 (patch-conv embed, cls
# token, learned pos-embed, pre-norm blocks: MHSA + GELU-MLP, final norm,
# linear head on the cls token) at small, in-script dimensions.  Pretrained
# weights cannot be loaded here; parameters are initialized deterministically.

CFG = dict(
    img_size=32,
    patch_size=16,
    in_chans=3,
    embed_dim=128,     # multiple of 128 -> lane-dense layout
    depth=2,
    num_heads=4,
    mlp_ratio=4,
    num_classes=100,
)


def init_params(key, cfg):
    D = cfg["embed_dim"]
    P = cfg["patch_size"]
    C = cfg["in_chans"]
    depth = cfg["depth"]
    Dmlp = D * cfg["mlp_ratio"]
    nh = cfg["num_heads"]
    Dh = D // nh
    N = (cfg["img_size"] // P) ** 2
    S = N + 1
    S_pad = ((S + 7) // 8) * 8
    NC = cfg["num_classes"]

    keys = iter(jax.random.split(key, 12))

    def rnd(shape, scale=0.02):
        return jax.random.normal(next(keys), shape, jnp.float32) * scale

    # Fold the 1/sqrt(Dh) attention scale into Wq (one-time parameter transform).
    attn_scale = 1.0 / math.sqrt(Dh)
    wq = rnd((depth, D, D)) * attn_scale
    wk = rnd((depth, D, D))
    wv = rnd((depth, D, D))
    qkv_w = jnp.concatenate([wq, wk, wv], axis=-1).astype(jnp.bfloat16)  # (depth, D, 3D)

    ones = jnp.ones((depth, 1, D), jnp.float32)
    zeros = jnp.zeros((depth, 1, D), jnp.float32)
    # Packed per-layer (1, D) vectors: [ln1_g, ln1_b, proj_b, ln2_g, ln2_b, fc2_b]
    vecs = jnp.concatenate([ones, zeros, zeros, ones, zeros, zeros], axis=1)

    pos = rnd((S, D))
    pos_pad = jnp.pad(pos, ((0, S_pad - S), (0, 0)))       # pad rows are zero

    params = {
        "patch_w": rnd((C * P * P, D)).astype(jnp.bfloat16),
        "patch_b": jnp.zeros((D,), jnp.float32),
        "cls_token": rnd((1, D)),
        "pos_embed": pos_pad,                               # (S_pad, D)
        "norm_g": jnp.ones((D,), jnp.float32),
        "norm_b": jnp.zeros((D,), jnp.float32),
        "head_w": rnd((D, NC)).astype(jnp.bfloat16),
        "head_b": jnp.zeros((NC,), jnp.float32),
        "blocks": {
            "qkv_w": qkv_w,                                             # (depth, D, 3D) bf16
            "qkv_b": jnp.zeros((depth, 1, 3 * D), jnp.float32),
            "proj_w": rnd((depth, D, D)).astype(jnp.bfloat16),
            "vecs": vecs,                                               # (depth, 6, D) f32
            "fc1_w": rnd((depth, D, Dmlp)).astype(jnp.bfloat16),
            "fc1_b": jnp.zeros((depth, 1, Dmlp), jnp.float32),
            "fc2_w": rnd((depth, Dmlp, D)).astype(jnp.bfloat16),
        },
    }
    return params


def vit_forward(params, x, cfg):
    B, C, H, W = x.shape
    P = cfg["patch_size"]
    D = cfg["embed_dim"]
    nh = cfg["num_heads"]
    Dh = D // nh
    gh, gw = H // P, W // P
    N = gh * gw
    S = N + 1

    # Patch embedding: the 16x16/stride-16 conv is exactly a matmul over
    # flattened (C, Ph, Pw) patch pixels (same ordering as the conv weight).
    patches = (x.reshape(B, C, gh, P, gw, P)
                .transpose(0, 2, 4, 1, 3, 5)
                .reshape(B, N, C * P * P))
    x_tok = patch_embed_tokens(patches, params["patch_w"], params["patch_b"],
                               params["cls_token"], params["pos_embed"])   # (B, S_pad, D)

    # All transformer blocks in a single fused pallas_call.
    x_tok = transformer_blocks(x_tok, params["blocks"], nh=nh, Dh=Dh, n_valid=S)

    # Final norm + head on the cls token only.
    cls = x_tok[:, 0, :]                                                   # (B, D)
    return final_norm_head(cls, params["norm_g"], params["norm_b"],
                           params["head_w"], params["head_b"])             # (B, NC)


if __name__ == "__main__":
    key = jax.random.PRNGKey(0)
    pkey, xkey = jax.random.split(key)
    params = init_params(pkey, CFG)
    x = jax.random.normal(xkey, (2, CFG["in_chans"], CFG["img_size"], CFG["img_size"]),
                          jnp.float32)

    fwd = jax.jit(functools.partial(vit_forward, cfg=CFG))
    logits = fwd(params, x)
    jax.block_until_ready(logits)
    assert logits.shape == (2, CFG["num_classes"]), logits.shape
    assert bool(jnp.all(jnp.isfinite(logits)))
    print("KERNEL_OK")
</pallas_src>

<mosaic_0001>
module attributes {stable_mosaic.version = 11 : i64} {
  func.func @_patch_embed_kernel(%arg0: i32, %arg1: memref<1x4x768xf32, #tpu.memory_space<vmem>>, %arg2: memref<768x128xbf16, #tpu.memory_space<vmem>>, %arg3: memref<1x128xf32, #tpu.memory_space<vmem>>, %arg4: memref<1x128xf32, #tpu.memory_space<vmem>>, %arg5: memref<8x128xf32, #tpu.memory_space<vmem>>, %arg6: memref<1x8x128xf32, #tpu.memory_space<vmem>>) attributes {dimension_semantics = [#tpu.dimension_semantics<parallel>], iteration_bounds = array<i64: 2>, scalar_prefetch = 0 : i64, scratch_operands = 0 : i64, tpu.core_type = #tpu.core_type<tc>, window_params = [{transform_indices = @transform_0, window_bounds = array<i64: 1, 4, 768>}, {pipeline_mode = #tpu.pipeline_mode<synchronous>, transform_indices = @transform_1, window_bounds = array<i64: 768, 128>}, {pipeline_mode = #tpu.pipeline_mode<synchronous>, transform_indices = @transform_2, window_bounds = array<i64: 1, 128>}, {pipeline_mode = #tpu.pipeline_mode<synchronous>, transform_indices = @transform_3, window_bounds = array<i64: 1, 128>}, {pipeline_mode = #tpu.pipeline_mode<synchronous>, transform_indices = @transform_4, window_bounds = array<i64: 8, 128>}, {transform_indices = @transform_5, window_bounds = array<i64: 1, 8, 128>}]} {
    %c0 = arith.constant 0 : index
    %c0_0 = arith.constant 0 : index
    %c0_1 = arith.constant 0 : index
    %0 = vector.load %arg1[%c0, %c0_0, %c0_1] : memref<1x4x768xf32, #tpu.memory_space<vmem>>, vector<1x4x768xf32>
    %1 = vector.shape_cast %0 : vector<1x4x768xf32> to vector<4x768xf32>
    %2 = arith.truncf %1 : vector<4x768xf32> to vector<4x768xbf16>
    %c0_2 = arith.constant 0 : index
    %c0_3 = arith.constant 0 : index
    %3 = vector.load %arg2[%c0_2, %c0_3] : memref<768x128xbf16, #tpu.memory_space<vmem>>, vector<768x128xbf16>
    %cst = arith.constant dense<0.000000e+00> : vector<4x128xf32>
    %4 = tpu.matmul %2, %3, %cst {dimension_numbers = #tpu.dot_dimension_numbers<[1], [0], [0], [1], [0, 0, 1, 1], [], []>} : vector<4x768xbf16>, vector<768x128xbf16>, vector<4x128xf32> -> vector<4x128xf32>
    %c0_4 = arith.constant 0 : index
    %c0_5 = arith.constant 0 : index
    %5 = vector.load %arg3[%c0_4, %c0_5] : memref<1x128xf32, #tpu.memory_space<vmem>>, vector<1x128xf32>
    %6 = vector.broadcast %5 : vector<1x128xf32> to vector<4x128xf32>
    %7 = arith.addf %4, %6 : vector<4x128xf32>
    %c0_6 = arith.constant 0 : index
    %c0_7 = arith.constant 0 : index
    %8 = vector.load %arg5[%c0_6, %c0_7] : memref<8x128xf32, #tpu.memory_space<vmem>>, vector<8x128xf32>
    %cst_8 = arith.constant 0.000000e+00 : f32
    %9 = vector.broadcast %cst_8 : f32 to vector<8x128xf32>
    %c0_9 = arith.constant 0 : index
    %c0_10 = arith.constant 0 : index
    %c0_11 = arith.constant 0 : index
    %10 = vector.load %arg6[%c0_9, %c0_10, %c0_11] : memref<1x8x128xf32, #tpu.memory_space<vmem>>, vector<1x8x128xf32>
    %11 = vector.shape_cast %10 : vector<1x8x128xf32> to vector<8x128xf32>
    %12 = vector.shape_cast %9 : vector<8x128xf32> to vector<1x8x128xf32>
    tpu.vector_store %arg6[%c0_9, %c0_10, %c0_11], %12 {strides = array<i32>} : memref<1x8x128xf32, #tpu.memory_space<vmem>>, vector<1x8x128xf32>,
    %c0_12 = arith.constant 0 : index
    %c0_13 = arith.constant 0 : index
    %13 = vector.load %arg4[%c0_12, %c0_13] : memref<1x128xf32, #tpu.memory_space<vmem>>, vector<1x128xf32>
    %14 = vector.extract_strided_slice %8 {offsets = [0, 0], sizes = [1, 128], strides = [1, 1]} : vector<8x128xf32> to vector<1x128xf32>
    %15 = arith.addf %13, %14 : vector<1x128xf32>
    %c0_14 = arith.constant 0 : index
    %c0_15 = arith.constant 0 : index
    %c0_16 = arith.constant 0 : index
    %16 = vector.load %arg6[%c0_14, %c0_15, %c0_16] : memref<1x8x128xf32, #tpu.memory_space<vmem>>, vector<1x1x128xf32>
    %17 = vector.shape_cast %16 : vector<1x1x128xf32> to vector<1x128xf32>
    %18 = vector.shape_cast %15 : vector<1x128xf32> to vector<1x1x128xf32>
    tpu.vector_store %arg6[%c0_14, %c0_15, %c0_16], %18 {strides = array<i32>} : memref<1x8x128xf32, #tpu.memory_space<vmem>>, vector<1x1x128xf32>,
    %19 = vector.extract_strided_slice %8 {offsets = [1, 0], sizes = [4, 128], strides = [1, 1]} : vector<8x128xf32> to vector<4x128xf32>
    %20 = arith.addf %7, %19 : vector<4x128xf32>
    %c0_17 = arith.constant 0 : index
    %c1 = arith.constant 1 : index
    %c0_18 = arith.constant 0 : index
    %21 = vector.load %arg6[%c0_17, %c1, %c0_18] : memref<1x8x128xf32, #tpu.memory_space<vmem>>, vector<1x4x128xf32>
    %22 = vector.shape_cast %21 : vector<1x4x128xf32> to vector<4x128xf32>
    %23 = vector.shape_cast %20 : vector<4x128xf32> to vector<1x4x128xf32>
    tpu.vector_store %arg6[%c0_17, %c1, %c0_18], %23 {strides = array<i32>} : memref<1x8x128xf32, #tpu.memory_space<vmem>>, vector<1x4x128xf32>,
    return
  }
  func.func @transform_0(%arg0: i32) -> (i32, i32, i32) {
    %c0_i32 = arith.constant 0 : i32
    %c0_i32_0 = arith.constant 0 : i32
    %c0_i32_1 = arith.constant 0 : i32
    return %arg0, %c0_i32, %c0_i32_0 : i32, i32, i32
  }
  func.func @transform_1(%arg0: i32) -> (i32, i32) {
    %c0_i32 = arith.constant 0 : i32
    %c0_i32_0 = arith.constant 0 : i32
    %c0_i32_1 = arith.constant 0 : i32
    return %c0_i32, %c0_i32_0 : i32, i32
  }
  func.func @transform_2(%arg0: i32) -> (i32, i32) {
    %c0_i32 = arith.constant 0 : i32
    %c0_i32_0 = arith.constant 0 : i32
    %c0_i32_1 = arith.constant 0 : i32
    return %c0_i32, %c0_i32_0 : i32, i32
  }
  func.func @transform_3(%arg0: i32) -> (i32, i32) {
    %c0_i32 = arith.constant 0 : i32
    %c0_i32_0 = arith.constant 0 : i32
    %c0_i32_1 = arith.constant 0 : i32
    return %c0_i32, %c0_i32_0 : i32, i32
  }
  func.func @transform_4(%arg0: i32) -> (i32, i32) {
    %c0_i32 = arith.constant 0 : i32
    %c0_i32_0 = arith.constant 0 : i32
    %c0_i32_1 = arith.constant 0 : i32
    return %c0_i32, %c0_i32_0 : i32, i32
  }
  func.func @transform_5(%arg0: i32) -> (i32, i32, i32) {
    %c0_i32 = arith.constant 0 : i32
    %c0_i32_0 = arith.constant 0 : i32
    %c0_i32_1 = arith.constant 0 : i32
    return %arg0, %c0_i32, %c0_i32_0 : i32, i32, i32
  }
}

module attributes {stable_mosaic.version = 11 : i64} {
  func.func @_vit_blocks_kernel(%arg0: i32, %arg1: i32, %arg2: memref<1x8x128xf32, #tpu.memory_space<vmem>>, %arg3: memref<2x128x384xbf16, #tpu.memory_space<vmem>>, %arg4: memref<2x1x384xf32, #tpu.memory_space<vmem>>, %arg5: memref<2x128x128xbf16, #tpu.memory_space<vmem>>, %arg6: memref<2x6x128xf32, #tpu.memory_space<vmem>>, %arg7: memref<2x128x512xbf16, #tpu.memory_space<vmem>>, %arg8: memref<2x1x512xf32, #tpu.memory_space<vmem>>, %arg9: memref<2x512x128xbf16, #tpu.memory_space<vmem>>, %arg10: memref<1x8x128xf32, #tpu.memory_space<vmem>>) attributes {dimension_semantics = [#tpu.dimension_semantics<parallel>, #tpu.dimension_semantics<arbitrary>], iteration_bounds = array<i64: 2, 2>, scalar_prefetch = 0 : i64, scratch_operands = 0 : i64, tpu.core_type = #tpu.core_type<tc>, window_params = [{transform_indices = @transform_0, window_bounds = array<i64: 1, 8, 128>}, {pipeline_mode = #tpu.pipeline_mode<synchronous>, transform_indices = @transform_1, window_bounds = array<i64: 2, 128, 384>}, {pipeline_mode = #tpu.pipeline_mode<synchronous>, transform_indices = @transform_2, window_bounds = array<i64: 2, 1, 384>}, {pipeline_mode = #tpu.pipeline_mode<synchronous>, transform_indices = @transform_3, window_bounds = array<i64: 2, 128, 128>}, {pipeline_mode = #tpu.pipeline_mode<synchronous>, transform_indices = @transform_4, window_bounds = array<i64: 2, 6, 128>}, {pipeline_mode = #tpu.pipeline_mode<synchronous>, transform_indices = @transform_5, window_bounds = array<i64: 2, 128, 512>}, {pipeline_mode = #tpu.pipeline_mode<synchronous>, transform_indices = @transform_6, window_bounds = array<i64: 2, 1, 512>}, {pipeline_mode = #tpu.pipeline_mode<synchronous>, transform_indices = @transform_7, window_bounds = array<i64: 2, 512, 128>}, {transform_indices = @transform_8, window_bounds = array<i64: 1, 8, 128>}]} {
    %c0_i32 = arith.constant 0 : i32
    %0 = arith.cmpi eq, %arg1, %c0_i32 : i32
    %1 = arith.extui %0 : i1 to i32
    %c0_i32_0 = arith.constant 0 : i32
    %2 = arith.cmpi ne, %1, %c0_i32_0 : i32
    scf.if %2 {
      %c0_61 = arith.constant 0 : index
      %c0_62 = arith.constant 0 : index
      %c0_63 = arith.constant 0 : index
      %196 = vector.load %arg2[%c0_61, %c0_62, %c0_63] : memref<1x8x128xf32, #tpu.memory_space<vmem>>, vector<1x8x128xf32>
      %197 = vector.shape_cast %196 : vector<1x8x128xf32> to vector<8x128xf32>
      %c0_64 = arith.constant 0 : index
      %c0_65 = arith.constant 0 : index
      %c0_66 = arith.constant 0 : index
      %198 = vector.load %arg10[%c0_64, %c0_65, %c0_66] : memref<1x8x128xf32, #tpu.memory_space<vmem>>, vector<1x8x128xf32>
      %199 = vector.shape_cast %198 : vector<1x8x128xf32> to vector<8x128xf32>
      %200 = vector.shape_cast %197 : vector<8x128xf32> to vector<1x8x128xf32>
      tpu.vector_store %arg10[%c0_64, %c0_65, %c0_66], %200 {strides = array<i32>} : memref<1x8x128xf32, #tpu.memory_space<vmem>>, vector<1x8x128xf32>,
    } else {
    }
    %c0 = arith.constant 0 : index
    %c0_1 = arith.constant 0 : index
    %c0_2 = arith.constant 0 : index
    %3 = vector.load %arg10[%c0, %c0_1, %c0_2] : memref<1x8x128xf32, #tpu.memory_space<vmem>>, vector<1x8x128xf32>
    %4 = vector.shape_cast %3 : vector<1x8x128xf32> to vector<8x128xf32>
    %5 = arith.index_cast %arg1 : i32 to index
    %c0_3 = arith.constant 0 : index
    %c0_4 = arith.constant 0 : index
    %6 = vector.load %arg6[%5, %c0_3, %c0_4] : memref<2x6x128xf32, #tpu.memory_space<vmem>>, vector<1x6x128xf32>
    %7 = vector.shape_cast %6 : vector<1x6x128xf32> to vector<6x128xf32>
    %8 = vector.extract_strided_slice %7 {offsets = [0, 0], sizes = [1, 128], strides = [1, 1]} : vector<6x128xf32> to vector<1x128xf32>
    %9 = vector.extract_strided_slice %7 {offsets = [1, 0], sizes = [1, 128], strides = [1, 1]} : vector<6x128xf32> to vector<1x128xf32>
    %10 = vector.extract_strided_slice %7 {offsets = [2, 0], sizes = [1, 128], strides = [1, 1]} : vector<6x128xf32> to vector<1x128xf32>
    %11 = vector.extract_strided_slice %7 {offsets = [3, 0], sizes = [1, 128], strides = [1, 1]} : vector<6x128xf32> to vector<1x128xf32>
    %12 = vector.extract_strided_slice %7 {offsets = [4, 0], sizes = [1, 128], strides = [1, 1]} : vector<6x128xf32> to vector<1x128xf32>
    %13 = vector.extract_strided_slice %7 {offsets = [5, 0], sizes = [1, 128], strides = [1, 1]} : vector<6x128xf32> to vector<1x128xf32>
    %cst = arith.constant dense<0.000000e+00> : vector<8xf32>
    %14 = vector.multi_reduction <add>, %4, %cst [1] : vector<8x128xf32> to vector<8xf32>
    %15 = vector.shape_cast %14 : vector<8xf32> to vector<8x1xf32>
    %cst_5 = arith.constant 1.280000e+02 : f32
    %16 = vector.broadcast %cst_5 : f32 to vector<8x1xf32>
    %17 = arith.divf %15, %16 : vector<8x1xf32>
    %18 = vector.broadcast %17 : vector<8x1xf32> to vector<8x128xf32>
    %19 = arith.subf %4, %18 : vector<8x128xf32>
    %20 = arith.mulf %19, %19 : vector<8x128xf32>
    %cst_6 = arith.constant dense<0.000000e+00> : vector<8xf32>
    %21 = vector.multi_reduction <add>, %20, %cst_6 [1] : vector<8x128xf32> to vector<8xf32>
    %22 = vector.shape_cast %21 : vector<8xf32> to vector<8x1xf32>
    %cst_7 = arith.constant 1.280000e+02 : f32
    %23 = vector.broadcast %cst_7 : f32 to vector<8x1xf32>
    %24 = arith.divf %22, %23 : vector<8x1xf32>
    %25 = vector.broadcast %17 : vector<8x1xf32> to vector<8x128xf32>
    %26 = arith.subf %4, %25 : vector<8x128xf32>
    %cst_8 = arith.constant 9.99999997E-7 : f32
    %27 = vector.broadcast %cst_8 : f32 to vector<8x1xf32>
    %28 = arith.addf %24, %27 : vector<8x1xf32>
    %29 = math.rsqrt %28 : vector<8x1xf32>
    %30 = vector.broadcast %29 : vector<8x1xf32> to vector<8x128xf32>
    %31 = arith.mulf %26, %30 : vector<8x128xf32>
    %32 = vector.broadcast %8 : vector<1x128xf32> to vector<8x128xf32>
    %33 = arith.mulf %31, %32 : vector<8x128xf32>
    %34 = vector.broadcast %9 : vector<1x128xf32> to vector<8x128xf32>
    %35 = arith.addf %33, %34 : vector<8x128xf32>
    %36 = arith.truncf %35 : vector<8x128xf32> to vector<8x128xbf16>
    %37 = arith.index_cast %arg1 : i32 to index
    %c0_9 = arith.constant 0 : index
    %c0_10 = arith.constant 0 : index
    %38 = vector.load %arg3[%37, %c0_9, %c0_10] : memref<2x128x384xbf16, #tpu.memory_space<vmem>>, vector<1x128x384xbf16>
    %39 = vector.shape_cast %38 : vector<1x128x384xbf16> to vector<128x384xbf16>
    %cst_11 = arith.constant dense<0.000000e+00> : vector<8x384xf32>
    %40 = tpu.matmul %36, %39, %cst_11 {dimension_numbers = #tpu.dot_dimension_numbers<[1], [0], [0], [1], [0, 0, 1, 1], [], []>} : vector<8x128xbf16>, vector<128x384xbf16>, vector<8x384xf32> -> vector<8x384xf32>
    %41 = arith.index_cast %arg1 : i32 to index
    %c0_12 = arith.constant 0 : index
    %c0_13 = arith.constant 0 : index
    %42 = vector.load %arg4[%41, %c0_12, %c0_13] : memref<2x1x384xf32, #tpu.memory_space<vmem>>, vector<1x1x384xf32>
    %43 = vector.shape_cast %42 : vector<1x1x384xf32> to vector<1x384xf32>
    %44 = vector.broadcast %43 : vector<1x384xf32> to vector<8x384xf32>
    %45 = arith.addf %40, %44 : vector<8x384xf32>
    %46 = tpu.iota {dimensions = array<i32: 1>} : vector<8x8xi32>
    %c5_i32 = arith.constant 5 : i32
    %47 = vector.broadcast %c5_i32 : i32 to vector<8x8xi32>
    %48 = arith.cmpi slt, %46, %47 : vector<8x8xi32>
    %49 = arith.index_cast %arg1 : i32 to index
    %c0_14 = arith.constant 0 : index
    %c0_15 = arith.constant 0 : index
    %50 = vector.load %arg5[%49, %c0_14, %c0_15] : memref<2x128x128xbf16, #tpu.memory_space<vmem>>, vector<1x128x128xbf16>
    %51 = vector.shape_cast %50 : vector<1x128x128xbf16> to vector<128x128xbf16>
    %cst_16 = arith.constant 0.000000e+00 : f32
    %52 = vector.broadcast %cst_16 : f32 to vector<8x128xf32>
    %53 = vector.extract_strided_slice %45 {offsets = [0, 0], sizes = [8, 32], strides = [1, 1]} : vector<8x384xf32> to vector<8x32xf32>
    %54 = vector.extract_strided_slice %45 {offsets = [0, 128], sizes = [8, 32], strides = [1, 1]} : vector<8x384xf32> to vector<8x32xf32>
    %55 = vector.extract_strided_slice %45 {offsets = [0, 256], sizes = [8, 32], strides = [1, 1]} : vector<8x384xf32> to vector<8x32xf32>
    %cst_17 = arith.constant dense<0.000000e+00> : vector<8x8xf32>
    %56 = tpu.matmul %53, %54, %cst_17 {dimension_numbers = #tpu.dot_dimension_numbers<[1], [1], [0], [0], [0, 0, 1, 0], [], []>} : vector<8x32xf32>, vector<8x32xf32>, vector<8x8xf32> -> vector<8x8xf32>
    %cst_18 = arith.constant -1.000000e+30 : f32
    %57 = vector.broadcast %cst_18 : f32 to vector<8x8xf32>
    %58 = arith.select %48, %56, %57 : vector<8x8xi1>, vector<8x8xf32>
    %cst_19 = arith.constant dense<0xFF800000> : vector<8xf32>
    %59 = vector.multi_reduction <maximumf>, %58, %cst_19 [1] : vector<8x8xf32> to vector<8xf32>
    %60 = vector.shape_cast %59 : vector<8xf32> to vector<8x1xf32>
    %61 = vector.broadcast %60 : vector<8x1xf32> to vector<8x8xf32>
    %62 = arith.subf %58, %61 : vector<8x8xf32>
    %63 = math.exp %62 : vector<8x8xf32>
    %cst_20 = arith.constant dense<0.000000e+00> : vector<8xf32>
    %64 = vector.multi_reduction <add>, %63, %cst_20 [1] : vector<8x8xf32> to vector<8xf32>
    %65 = vector.shape_cast %64 : vector<8xf32> to vector<8x1xf32>
    %66 = tpu.reciprocal %65 {approx = true} : vector<8x1xf32> -> vector<8x1xf32>
    %67 = vector.broadcast %66 : vector<8x1xf32> to vector<8x8xf32>
    %68 = arith.mulf %63, %67 : vector<8x8xf32>
    %cst_21 = arith.constant dense<0.000000e+00> : vector<8x32xf32>
    %69 = tpu.matmul %68, %55, %cst_21 {dimension_numbers = #tpu.dot_dimension_numbers<[1], [0], [0], [1], [0, 0, 1, 1], [], []>} : vector<8x8xf32>, vector<8x32xf32>, vector<8x32xf32> -> vector<8x32xf32>
    %70 = arith.truncf %69 : vector<8x32xf32> to vector<8x32xbf16>
    %71 = vector.extract_strided_slice %51 {offsets = [0, 0], sizes = [32, 128], strides = [1, 1]} : vector<128x128xbf16> to vector<32x128xbf16>
    %cst_22 = arith.constant dense<0.000000e+00> : vector<8x128xf32>
    %72 = tpu.matmul %70, %71, %cst_22 {dimension_numbers = #tpu.dot_dimension_numbers<[1], [0], [0], [1], [0, 0, 1, 1], [], []>} : vector<8x32xbf16>, vector<32x128xbf16>, vector<8x128xf32> -> vector<8x128xf32>
    %73 = arith.addf %52, %72 : vector<8x128xf32>
    %74 = vector.extract_strided_slice %45 {offsets = [0, 32], sizes = [8, 32], strides = [1, 1]} : vector<8x384xf32> to vector<8x32xf32>
    %75 = vector.extract_strided_slice %45 {offsets = [0, 160], sizes = [8, 32], strides = [1, 1]} : vector<8x384xf32> to vector<8x32xf32>
    %76 = vector.extract_strided_slice %45 {offsets = [0, 288], sizes = [8, 32], strides = [1, 1]} : vector<8x384xf32> to vector<8x32xf32>
    %cst_23 = arith.constant dense<0.000000e+00> : vector<8x8xf32>
    %77 = tpu.matmul %74, %75, %cst_23 {dimension_numbers = #tpu.dot_dimension_numbers<[1], [1], [0], [0], [0, 0, 1, 0], [], []>} : vector<8x32xf32>, vector<8x32xf32>, vector<8x8xf32> -> vector<8x8xf32>
    %cst_24 = arith.constant -1.000000e+30 : f32
    %78 = vector.broadcast %cst_24 : f32 to vector<8x8xf32>
    %79 = arith.select %48, %77, %78 : vector<8x8xi1>, vector<8x8xf32>
    %cst_25 = arith.constant dense<0xFF800000> : vector<8xf32>
    %80 = vector.multi_reduction <maximumf>, %79, %cst_25 [1] : vector<8x8xf32> to vector<8xf32>
    %81 = vector.shape_cast %80 : vector<8xf32> to vector<8x1xf32>
    %82 = vector.broadcast %81 : vector<8x1xf32> to vector<8x8xf32>
    %83 = arith.subf %79, %82 : vector<8x8xf32>
    %84 = math.exp %83 : vector<8x8xf32>
    %cst_26 = arith.constant dense<0.000000e+00> : vector<8xf32>
    %85 = vector.multi_reduction <add>, %84, %cst_26 [1] : vector<8x8xf32> to vector<8xf32>
    %86 = vector.shape_cast %85 : vector<8xf32> to vector<8x1xf32>
    %87 = tpu.reciprocal %86 {approx = true} : vector<8x1xf32> -> vector<8x1xf32>
    %88 = vector.broadcast %87 : vector<8x1xf32> to vector<8x8xf32>
    %89 = arith.mulf %84, %88 : vector<8x8xf32>
    %cst_27 = arith.constant dense<0.000000e+00> : vector<8x32xf32>
    %90 = tpu.matmul %89, %76, %cst_27 {dimension_numbers = #tpu.dot_dimension_numbers<[1], [0], [0], [1], [0, 0, 1, 1], [], []>} : vector<8x8xf32>, vector<8x32xf32>, vector<8x32xf32> -> vector<8x32xf32>
    %91 = arith.truncf %90 : vector<8x32xf32> to vector<8x32xbf16>
    %92 = vector.extract_strided_slice %51 {offsets = [32, 0], sizes = [32, 128], strides = [1, 1]} : vector<128x128xbf16> to vector<32x128xbf16>
    %cst_28 = arith.constant dense<0.000000e+00> : vector<8x128xf32>
    %93 = tpu.matmul %91, %92, %cst_28 {dimension_numbers = #tpu.dot_dimension_numbers<[1], [0], [0], [1], [0, 0, 1, 1], [], []>} : vector<8x32xbf16>, vector<32x128xbf16>, vector<8x128xf32> -> vector<8x128xf32>
    %94 = arith.addf %73, %93 : vector<8x128xf32>
    %95 = vector.extract_strided_slice %45 {offsets = [0, 64], sizes = [8, 32], strides = [1, 1]} : vector<8x384xf32> to vector<8x32xf32>
    %96 = vector.extract_strided_slice %45 {offsets = [0, 192], sizes = [8, 32], strides = [1, 1]} : vector<8x384xf32> to vector<8x32xf32>
    %97 = vector.extract_strided_slice %45 {offsets = [0, 320], sizes = [8, 32], strides = [1, 1]} : vector<8x384xf32> to vector<8x32xf32>
    %cst_29 = arith.constant dense<0.000000e+00> : vector<8x8xf32>
    %98 = tpu.matmul %95, %96, %cst_29 {dimension_numbers = #tpu.dot_dimension_numbers<[1], [1], [0], [0], [0, 0, 1, 0], [], []>} : vector<8x32xf32>, vector<8x32xf32>, vector<8x8xf32> -> vector<8x8xf32>
    %cst_30 = arith.constant -1.000000e+30 : f32
    %99 = vector.broadcast %cst_30 : f32 to vector<8x8xf32>
    %100 = arith.select %48, %98, %99 : vector<8x8xi1>, vector<8x8xf32>
    %cst_31 = arith.constant dense<0xFF800000> : vector<8xf32>
    %101 = vector.multi_reduction <maximumf>, %100, %cst_31 [1] : vector<8x8xf32> to vector<8xf32>
    %102 = vector.shape_cast %101 : vector<8xf32> to vector<8x1xf32>
    %103 = vector.broadcast %102 : vector<8x1xf32> to vector<8x8xf32>
    %104 = arith.subf %100, %103 : vector<8x8xf32>
    %105 = math.exp %104 : vector<8x8xf32>
    %cst_32 = arith.constant dense<0.000000e+00> : vector<8xf32>
    %106 = vector.multi_reduction <add>, %105, %cst_32 [1] : vector<8x8xf32> to vector<8xf32>
    %107 = vector.shape_cast %106 : vector<8xf32> to vector<8x1xf32>
    %108 = tpu.reciprocal %107 {approx = true} : vector<8x1xf32> -> vector<8x1xf32>
    %109 = vector.broadcast %108 : vector<8x1xf32> to vector<8x8xf32>
    %110 = arith.mulf %105, %109 : vector<8x8xf32>
    %cst_33 = arith.constant dense<0.000000e+00> : vector<8x32xf32>
    %111 = tpu.matmul %110, %97, %cst_33 {dimension_numbers = #tpu.dot_dimension_numbers<[1], [0], [0], [1], [0, 0, 1, 1], [], []>} : vector<8x8xf32>, vector<8x32xf32>, vector<8x32xf32> -> vector<8x32xf32>
    %112 = arith.truncf %111 : vector<8x32xf32> to vector<8x32xbf16>
    %113 = vector.extract_strided_slice %51 {offsets = [64, 0], sizes = [32, 128], strides = [1, 1]} : vector<128x128xbf16> to vector<32x128xbf16>
    %cst_34 = arith.constant dense<0.000000e+00> : vector<8x128xf32>
    %114 = tpu.matmul %112, %113, %cst_34 {dimension_numbers = #tpu.dot_dimension_numbers<[1], [0], [0], [1], [0, 0, 1, 1], [], []>} : vector<8x32xbf16>, vector<32x128xbf16>, vector<8x128xf32> -> vector<8x128xf32>
    %115 = arith.addf %94, %114 : vector<8x128xf32>
    %116 = vector.extract_strided_slice %45 {offsets = [0, 96], sizes = [8, 32], strides = [1, 1]} : vector<8x384xf32> to vector<8x32xf32>
    %117 = vector.extract_strided_slice %45 {offsets = [0, 224], sizes = [8, 32], strides = [1, 1]} : vector<8x384xf32> to vector<8x32xf32>
    %118 = vector.extract_strided_slice %45 {offsets = [0, 352], sizes = [8, 32], strides = [1, 1]} : vector<8x384xf32> to vector<8x32xf32>
    %cst_35 = arith.constant dense<0.000000e+00> : vector<8x8xf32>
    %119 = tpu.matmul %116, %117, %cst_35 {dimension_numbers = #tpu.dot_dimension_numbers<[1], [1], [0], [0], [0, 0, 1, 0], [], []>} : vector<8x32xf32>, vector<8x32xf32>, vector<8x8xf32> -> vector<8x8xf32>
    %cst_36 = arith.constant -1.000000e+30 : f32
    %120 = vector.broadcast %cst_36 : f32 to vector<8x8xf32>
    %121 = arith.select %48, %119, %120 : vector<8x8xi1>, vector<8x8xf32>
    %cst_37 = arith.constant dense<0xFF800000> : vector<8xf32>
    %122 = vector.multi_reduction <maximumf>, %121, %cst_37 [1] : vector<8x8xf32> to vector<8xf32>
    %123 = vector.shape_cast %122 : vector<8xf32> to vector<8x1xf32>
    %124 = vector.broadcast %123 : vector<8x1xf32> to vector<8x8xf32>
    %125 = arith.subf %121, %124 : vector<8x8xf32>
    %126 = math.exp %125 : vector<8x8xf32>
    %cst_38 = arith.constant dense<0.000000e+00> : vector<8xf32>
    %127 = vector.multi_reduction <add>, %126, %cst_38 [1] : vector<8x8xf32> to vector<8xf32>
    %128 = vector.shape_cast %127 : vector<8xf32> to vector<8x1xf32>
    %129 = tpu.reciprocal %128 {approx = true} : vector<8x1xf32> -> vector<8x1xf32>
    %130 = vector.broadcast %129 : vector<8x1xf32> to vector<8x8xf32>
    %131 = arith.mulf %126, %130 : vector<8x8xf32>
    %cst_39 = arith.constant dense<0.000000e+00> : vector<8x32xf32>
    %132 = tpu.matmul %131, %118, %cst_39 {dimension_numbers = #tpu.dot_dimension_numbers<[1], [0], [0], [1], [0, 0, 1, 1], [], []>} : vector<8x8xf32>, vector<8x32xf32>, vector<8x32xf32> -> vector<8x32xf32>
    %133 = arith.truncf %132 : vector<8x32xf32> to vector<8x32xbf16>
    %134 = vector.extract_strided_slice %51 {offsets = [96, 0], sizes = [32, 128], strides = [1, 1]} : vector<128x128xbf16> to vector<32x128xbf16>
    %cst_40 = arith.constant dense<0.000000e+00> : vector<8x128xf32>
    %135 = tpu.matmul %133, %134, %cst_40 {dimension_numbers = #tpu.dot_dimension_numbers<[1], [0], [0], [1], [0, 0, 1, 1], [], []>} : vector<8x32xbf16>, vector<32x128xbf16>, vector<8x128xf32> -> vector<8x128xf32>
    %136 = arith.addf %115, %135 : vector<8x128xf32>
    %137 = arith.addf %4, %136 : vector<8x128xf32>
    %138 = vector.broadcast %10 : vector<1x128xf32> to vector<8x128xf32>
    %139 = arith.addf %137, %138 : vector<8x128xf32>
    %cst_41 = arith.constant dense<0.000000e+00> : vector<8xf32>
    %140 = vector.multi_reduction <add>, %139, %cst_41 [1] : vector<8x128xf32> to vector<8xf32>
    %141 = vector.shape_cast %140 : vector<8xf32> to vector<8x1xf32>
    %cst_42 = arith.constant 1.280000e+02 : f32
    %142 = vector.broadcast %cst_42 : f32 to vector<8x1xf32>
    %143 = arith.divf %141, %142 : vector<8x1xf32>
    %144 = vector.broadcast %143 : vector<8x1xf32> to vector<8x128xf32>
    %145 = arith.subf %139, %144 : vector<8x128xf32>
    %146 = arith.mulf %145, %145 : vector<8x128xf32>
    %cst_43 = arith.constant dense<0.000000e+00> : vector<8xf32>
    %147 = vector.multi_reduction <add>, %146, %cst_43 [1] : vector<8x128xf32> to vector<8xf32>
    %148 = vector.shape_cast %147 : vector<8xf32> to vector<8x1xf32>
    %cst_44 = arith.constant 1.280000e+02 : f32
    %149 = vector.broadcast %cst_44 : f32 to vector<8x1xf32>
    %150 = arith.divf %148, %149 : vector<8x1xf32>
    %151 = vector.broadcast %143 : vector<8x1xf32> to vector<8x128xf32>
    %152 = arith.subf %139, %151 : vector<8x128xf32>
    %cst_45 = arith.constant 9.99999997E-7 : f32
    %153 = vector.broadcast %cst_45 : f32 to vector<8x1xf32>
    %154 = arith.addf %150, %153 : vector<8x1xf32>
    %155 = math.rsqrt %154 : vector<8x1xf32>
    %156 = vector.broadcast %155 : vector<8x1xf32> to vector<8x128xf32>
    %157 = arith.mulf %152, %156 : vector<8x128xf32>
    %158 = vector.broadcast %11 : vector<1x128xf32> to vector<8x128xf32>
    %159 = arith.mulf %157, %158 : vector<8x128xf32>
    %160 = vector.broadcast %12 : vector<1x128xf32> to vector<8x128xf32>
    %161 = arith.addf %159, %160 : vector<8x128xf32>
    %162 = arith.truncf %161 : vector<8x128xf32> to vector<8x128xbf16>
    %163 = arith.index_cast %arg1 : i32 to index
    %c0_46 = arith.constant 0 : index
    %c0_47 = arith.constant 0 : index
    %164 = vector.load %arg7[%163, %c0_46, %c0_47] : memref<2x128x512xbf16, #tpu.memory_space<vmem>>, vector<1x128x512xbf16>
    %165 = vector.shape_cast %164 : vector<1x128x512xbf16> to vector<128x512xbf16>
    %cst_48 = arith.constant dense<0.000000e+00> : vector<8x512xf32>
    %166 = tpu.matmul %162, %165, %cst_48 {dimension_numbers = #tpu.dot_dimension_numbers<[1], [0], [0], [1], [0, 0, 1, 1], [], []>} : vector<8x128xbf16>, vector<128x512xbf16>, vector<8x512xf32> -> vector<8x512xf32>
    %167 = arith.index_cast %arg1 : i32 to index
    %c0_49 = arith.constant 0 : index
    %c0_50 = arith.constant 0 : index
    %168 = vector.load %arg8[%167, %c0_49, %c0_50] : memref<2x1x512xf32, #tpu.memory_space<vmem>>, vector<1x1x512xf32>
    %169 = vector.shape_cast %168 : vector<1x1x512xf32> to vector<1x512xf32>
    %170 = vector.broadcast %169 : vector<1x512xf32> to vector<8x512xf32>
    %171 = arith.addf %166, %170 : vector<8x512xf32>
    %cst_51 = arith.constant 5.000000e-01 : f32
    %172 = vector.broadcast %cst_51 : f32 to vector<8x512xf32>
    %173 = arith.mulf %172, %171 : vector<8x512xf32>
    %cst_52 = arith.constant 4.471500e-02 : f32
    %174 = vector.broadcast %cst_52 : f32 to vector<8x512xf32>
    %175 = arith.mulf %174, %171 : vector<8x512xf32>
    %176 = arith.mulf %175, %171 : vector<8x512xf32>
    %177 = arith.mulf %176, %171 : vector<8x512xf32>
    %178 = arith.addf %171, %177 : vector<8x512xf32>
    %cst_53 = arith.constant 0.797884583 : f32
    %179 = vector.broadcast %cst_53 : f32 to vector<8x512xf32>
    %180 = arith.mulf %179, %178 : vector<8x512xf32>
    %181 = math.tanh %180 : vector<8x512xf32>
    %cst_54 = arith.constant 1.000000e+00 : f32
    %182 = vector.broadcast %cst_54 : f32 to vector<8x512xf32>
    %183 = arith.addf %182, %181 : vector<8x512xf32>
    %184 = arith.mulf %173, %183 : vector<8x512xf32>
    %185 = arith.truncf %184 : vector<8x512xf32> to vector<8x512xbf16>
    %186 = arith.index_cast %arg1 : i32 to index
    %c0_55 = arith.constant 0 : index
    %c0_56 = arith.constant 0 : index
    %187 = vector.load %arg9[%186, %c0_55, %c0_56] : memref<2x512x128xbf16, #tpu.memory_space<vmem>>, vector<1x512x128xbf16>
    %188 = vector.shape_cast %187 : vector<1x512x128xbf16> to vector<512x128xbf16>
    %cst_57 = arith.constant dense<0.000000e+00> : vector<8x128xf32>
    %189 = tpu.matmul %185, %188, %cst_57 {dimension_numbers = #tpu.dot_dimension_numbers<[1], [0], [0], [1], [0, 0, 1, 1], [], []>} : vector<8x512xbf16>, vector<512x128xbf16>, vector<8x128xf32> -> vector<8x128xf32>
    %190 = arith.addf %139, %189 : vector<8x128xf32>
    %191 = vector.broadcast %13 : vector<1x128xf32> to vector<8x128xf32>
    %192 = arith.addf %190, %191 : vector<8x128xf32>
    %c0_58 = arith.constant 0 : index
    %c0_59 = arith.constant 0 : index
    %c0_60 = arith.constant 0 : index
    %193 = vector.load %arg10[%c0_58, %c0_59, %c0_60] : memref<1x8x128xf32, #tpu.memory_space<vmem>>, vector<1x8x128xf32>
    %194 = vector.shape_cast %193 : vector<1x8x128xf32> to vector<8x128xf32>
    %195 = vector.shape_cast %192 : vector<8x128xf32> to vector<1x8x128xf32>
    tpu.vector_store %arg10[%c0_58, %c0_59, %c0_60], %195 {strides = array<i32>} : memref<1x8x128xf32, #tpu.memory_space<vmem>>, vector<1x8x128xf32>,
    return
  }
  func.func @transform_0(%arg0: i32, %arg1: i32) -> (i32, i32, i32) {
    %c0_i32 = arith.constant 0 : i32
    %c0_i32_0 = arith.constant 0 : i32
    %c0_i32_1 = arith.constant 0 : i32
    return %arg0, %c0_i32, %c0_i32_0 : i32, i32, i32
  }
  func.func @transform_1(%arg0: i32, %arg1: i32) -> (i32, i32, i32) {
    %c0_i32 = arith.constant 0 : i32
    %c0_i32_0 = arith.constant 0 : i32
    %c0_i32_1 = arith.constant 0 : i32
    %c0_i32_2 = arith.constant 0 : i32
    return %c0_i32, %c0_i32_0, %c0_i32_1 : i32, i32, i32
  }
  func.func @transform_2(%arg0: i32, %arg1: i32) -> (i32, i32, i32) {
    %c0_i32 = arith.constant 0 : i32
    %c0_i32_0 = arith.constant 0 : i32
    %c0_i32_1 = arith.constant 0 : i32
    %c0_i32_2 = arith.constant 0 : i32
    return %c0_i32, %c0_i32_0, %c0_i32_1 : i32, i32, i32
  }
  func.func @transform_3(%arg0: i32, %arg1: i32) -> (i32, i32, i32) {
    %c0_i32 = arith.constant 0 : i32
    %c0_i32_0 = arith.constant 0 : i32
    %c0_i32_1 = arith.constant 0 : i32
    %c0_i32_2 = arith.constant 0 : i32
    return %c0_i32, %c0_i32_0, %c0_i32_1 : i32, i32, i32
  }
  func.func @transform_4(%arg0: i32, %arg1: i32) -> (i32, i32, i32) {
    %c0_i32 = arith.constant 0 : i32
    %c0_i32_0 = arith.constant 0 : i32
    %c0_i32_1 = arith.constant 0 : i32
    %c0_i32_2 = arith.constant 0 : i32
    return %c0_i32, %c0_i32_0, %c0_i32_1 : i32, i32, i32
  }
  func.func @transform_5(%arg0: i32, %arg1: i32) -> (i32, i32, i32) {
    %c0_i32 = arith.constant 0 : i32
    %c0_i32_0 = arith.constant 0 : i32
    %c0_i32_1 = arith.constant 0 : i32
    %c0_i32_2 = arith.constant 0 : i32
    return %c0_i32, %c0_i32_0, %c0_i32_1 : i32, i32, i32
  }
  func.func @transform_6(%arg0: i32, %arg1: i32) -> (i32, i32, i32) {
    %c0_i32 = arith.constant 0 : i32
    %c0_i32_0 = arith.constant 0 : i32
    %c0_i32_1 = arith.constant 0 : i32
    %c0_i32_2 = arith.constant 0 : i32
    return %c0_i32, %c0_i32_0, %c0_i32_1 : i32, i32, i32
  }
  func.func @transform_7(%arg0: i32, %arg1: i32) -> (i32, i32, i32) {
    %c0_i32 = arith.constant 0 : i32
    %c0_i32_0 = arith.constant 0 : i32
    %c0_i32_1 = arith.constant 0 : i32
    %c0_i32_2 = arith.constant 0 : i32
    return %c0_i32, %c0_i32_0, %c0_i32_1 : i32, i32, i32
  }
  func.func @transform_8(%arg0: i32, %arg1: i32) -> (i32, i32, i32) {
    %c0_i32 = arith.constant 0 : i32
    %c0_i32_0 = arith.constant 0 : i32
    %c0_i32_1 = arith.constant 0 : i32
    return %arg0, %c0_i32, %c0_i32_0 : i32, i32, i32
  }
}

module attributes {stable_mosaic.version = 11 : i64} {
  func.func @_final_head_kernel(%arg0: i32, %arg1: memref<2x128xf32, #tpu.memory_space<vmem>>, %arg2: memref<1x128xf32, #tpu.memory_space<vmem>>, %arg3: memref<1x128xf32, #tpu.memory_space<vmem>>, %arg4: memref<128x128xbf16, #tpu.memory_space<vmem>>, %arg5: memref<1x128xf32, #tpu.memory_space<vmem>>, %arg6: memref<2x128xf32, #tpu.memory_space<vmem>>) attributes {dimension_semantics = [#tpu.dimension_semantics<arbitrary>], iteration_bounds = array<i64: 1>, scalar_prefetch = 0 : i64, scratch_operands = 0 : i64, tpu.core_type = #tpu.core_type<tc>, window_params = [{pipeline_mode = #tpu.pipeline_mode<synchronous>, transform_indices = @transform_0, window_bounds = array<i64: 2, 128>}, {pipeline_mode = #tpu.pipeline_mode<synchronous>, transform_indices = @transform_1, window_bounds = array<i64: 1, 128>}, {pipeline_mode = #tpu.pipeline_mode<synchronous>, transform_indices = @transform_2, window_bounds = array<i64: 1, 128>}, {pipeline_mode = #tpu.pipeline_mode<synchronous>, transform_indices = @transform_3, window_bounds = array<i64: 128, 128>}, {pipeline_mode = #tpu.pipeline_mode<synchronous>, transform_indices = @transform_4, window_bounds = array<i64: 1, 128>}, {pipeline_mode = #tpu.pipeline_mode<synchronous>, transform_indices = @transform_5, window_bounds = array<i64: 2, 128>}]} {
    %c0 = arith.constant 0 : index
    %c0_0 = arith.constant 0 : index
    %0 = vector.load %arg1[%c0, %c0_0] : memref<2x128xf32, #tpu.memory_space<vmem>>, vector<2x128xf32>
    %c0_1 = arith.constant 0 : index
    %c0_2 = arith.constant 0 : index
    %1 = vector.load %arg2[%c0_1, %c0_2] : memref<1x128xf32, #tpu.memory_space<vmem>>, vector<1x128xf32>
    %c0_3 = arith.constant 0 : index
    %c0_4 = arith.constant 0 : index
    %2 = vector.load %arg3[%c0_3, %c0_4] : memref<1x128xf32, #tpu.memory_space<vmem>>, vector<1x128xf32>
    %cst = arith.constant dense<0.000000e+00> : vector<2xf32>
    %3 = vector.multi_reduction <add>, %0, %cst [1] : vector<2x128xf32> to vector<2xf32>
    %4 = vector.shape_cast %3 : vector<2xf32> to vector<2x1xf32>
    %cst_5 = arith.constant 1.280000e+02 : f32
    %5 = vector.broadcast %cst_5 : f32 to vector<2x1xf32>
    %6 = arith.divf %4, %5 : vector<2x1xf32>
    %7 = vector.broadcast %6 : vector<2x1xf32> to vector<2x128xf32>
    %8 = arith.subf %0, %7 : vector<2x128xf32>
    %9 = arith.mulf %8, %8 : vector<2x128xf32>
    %cst_6 = arith.constant dense<0.000000e+00> : vector<2xf32>
    %10 = vector.multi_reduction <add>, %9, %cst_6 [1] : vector<2x128xf32> to vector<2xf32>
    %11 = vector.shape_cast %10 : vector<2xf32> to vector<2x1xf32>
    %cst_7 = arith.constant 1.280000e+02 : f32
    %12 = vector.broadcast %cst_7 : f32 to vector<2x1xf32>
    %13 = arith.divf %11, %12 : vector<2x1xf32>
    %14 = vector.broadcast %6 : vector<2x1xf32> to vector<2x128xf32>
    %15 = arith.subf %0, %14 : vector<2x128xf32>
    %cst_8 = arith.constant 9.99999997E-7 : f32
    %16 = vector.broadcast %cst_8 : f32 to vector<2x1xf32>
    %17 = arith.addf %13, %16 : vector<2x1xf32>
    %18 = math.rsqrt %17 : vector<2x1xf32>
    %19 = vector.broadcast %18 : vector<2x1xf32> to vector<2x128xf32>
    %20 = arith.mulf %15, %19 : vector<2x128xf32>
    %21 = vector.broadcast %1 : vector<1x128xf32> to vector<2x128xf32>
    %22 = arith.mulf %20, %21 : vector<2x128xf32>
    %23 = vector.broadcast %2 : vector<1x128xf32> to vector<2x128xf32>
    %24 = arith.addf %22, %23 : vector<2x128xf32>
    %25 = arith.truncf %24 : vector<2x128xf32> to vector<2x128xbf16>
    %c0_9 = arith.constant 0 : index
    %c0_10 = arith.constant 0 : index
    %26 = vector.load %arg4[%c0_9, %c0_10] : memref<128x128xbf16, #tpu.memory_space<vmem>>, vector<128x128xbf16>
    %cst_11 = arith.constant dense<0.000000e+00> : vector<2x128xf32>
    %27 = tpu.matmul %25, %26, %cst_11 {dimension_numbers = #tpu.dot_dimension_numbers<[1], [0], [0], [1], [0, 0, 1, 1], [], []>} : vector<2x128xbf16>, vector<128x128xbf16>, vector<2x128xf32> -> vector<2x128xf32>
    %c0_12 = arith.constant 0 : index
    %c0_13 = arith.constant 0 : index
    %28 = vector.load %arg5[%c0_12, %c0_13] : memref<1x128xf32, #tpu.memory_space<vmem>>, vector<1x128xf32>
    %29 = vector.broadcast %28 : vector<1x128xf32> to vector<2x128xf32>
    %30 = arith.addf %27, %29 : vector<2x128xf32>
    %c0_14 = arith.constant 0 : index
    %c0_15 = arith.constant 0 : index
    %31 = vector.load %arg6[%c0_14, %c0_15] : memref<2x128xf32, #tpu.memory_space<vmem>>, vector<2x128xf32>
    tpu.vector_store %arg6[%c0_14, %c0_15], %30 {strides = array<i32>} : memref<2x128xf32, #tpu.memory_space<vmem>>, vector<2x128xf32>,
    return
  }
  func.func @transform_0(%arg0: i32) -> (i32, i32) {
    %c0_i32 = arith.constant 0 : i32
    %c0_i32_0 = arith.constant 0 : i32
    %c0_i32_1 = arith.constant 0 : i32
    return %c0_i32, %c0_i32_0 : i32, i32
  }
  func.func @transform_1(%arg0: i32) -> (i32, i32) {
    %c0_i32 = arith.constant 0 : i32
    %c0_i32_0 = arith.constant 0 : i32
    %c0_i32_1 = arith.constant 0 : i32
    return %c0_i32, %c0_i32_0 : i32, i32
  }
  func.func @transform_2(%arg0: i32) -> (i32, i32) {
    %c0_i32 = arith.constant 0 : i32
    %c0_i32_0 = arith.constant 0 : i32
    %c0_i32_1 = arith.constant 0 : i32
    return %c0_i32, %c0_i32_0 : i32, i32
  }
  func.func @transform_3(%arg0: i32) -> (i32, i32) {
    %c0_i32 = arith.constant 0 : i32
    %c0_i32_0 = arith.constant 0 : i32
    %c0_i32_1 = arith.constant 0 : i32
    return %c0_i32, %c0_i32_0 : i32, i32
  }
  func.func @transform_4(%arg0: i32) -> (i32, i32) {
    %c0_i32 = arith.constant 0 : i32
    %c0_i32_0 = arith.constant 0 : i32
    %c0_i32_1 = arith.constant 0 : i32
    return %c0_i32, %c0_i32_0 : i32, i32
  }
  func.func @transform_5(%arg0: i32) -> (i32, i32) {
    %c0_i32 = arith.constant 0 : i32
    %c0_i32_0 = arith.constant 0 : i32
    %c0_i32_1 = arith.constant 0 : i32
    return %c0_i32, %c0_i32_0 : i32, i32
  }
}

</mosaic_0001>

<bundles_post_ra>
// kernel: vit_forward.3
= control target key start
LH: loop header
LB: loop body
LE: loop exit
PB: predicated region body
PF: predicated region fallthrough
CT: control target
= control target key end

     0   :  { %s1040_s18 = smov 0   ;;  %s1224_s0 = inlined_call_operand.vmem [shape: f32[2,4,768], index: 0, kind: input, shape index: {}]   ;;  %s1225_s1 = inlined_call_operand.vmem [shape: bf16[768,128], index: 1, kind: input, shape index: {}]   ;;  %s1226_s2 = inlined_call_operand.vmem [shape: f32[1,128], index: 2, kind: input, shape index: {}]   ;;  %s1227_s3 = inlined_call_operand.vmem [shape: f32[1,128], index: 3, kind: input, shape index: {}]   ;;  %s1228_s4 = inlined_call_operand.vmem [shape: f32[8,128], index: 4, kind: input, shape index: {}]   ;;  %s1229_s5 = inlined_call_operand.vmem [shape: f32[2,8,128], index: 5, kind: output, shape index: {}]  }
   0x1 LB: > { %s816_s19 = sadd.s32 4294967295, %s1007_s18   ;;  %p820_p0 = scmp.ge.s32.totalorder %s1007_s18, 1  ;;  %s1007_s18 = sphi %s1040_s18, %s15_s18  }
   0x2   : > { %p187_p1 = scmp.lt.s32.totalorder %s1007_s18, 3 }
   0x4   : > { %p188_p2 = pnand %p820_p0, %p187_p1 }
   0x5   : > { %v950_v0 = vld [vmem:[%s1225_s1 + $0x40] sm:$0xff] (!%p188_p2)   ;;  %p214_p3 = scmp.lt.s32.totalorder (!%p188_p2), %s816_s19, 1  ;;  %v954_v4 = vld [vmem:[%s1225_s1 + $0x48] sm:$0xff] (!%p188_p2)   ;;  %v1009_v8 = vmov (!%p188_p2), 0.0   ;;  %v958_v9 = vld [vmem:[%s1225_s1 + $0x50] sm:$0xff] (!%p188_p2)  }
   0x6   : > { %191 = sbr.rel (%p188_p2) target bundleno = 290 (0x122), region = 40  ;;  %v951_v1 = vld [vmem:[%s1225_s1] sm:$0xff] (!%p188_p2)   ;;  %874 = vmatprep.subr.bf16.mxu0 (!%p188_p2), %v950_v0  ;;  %v955_v5 = vld [vmem:[%s1225_s1 + $0x8] sm:$0xff] (!%p188_p2)   ;;  %v959_v10 = vld [vmem:[%s1225_s1 + $0x10] sm:$0xff] (!%p188_p2)  }
   0x7   : > { %v952_v2 = vld [vmem:[%s1225_s1 + $0xc0] sm:$0xff] (!%p188_p2)   ;;  %875 = vmatpush3.bf16.msra.mxu0 (!%p188_p2), %v951_v1  ;;  %v956_v6 = vld [vmem:[%s1225_s1 + $0xc8] sm:$0xff] (!%p188_p2)   ;;  %v960_v11 = vld [vmem:[%s1225_s1 + $0xd0] sm:$0xff] (!%p188_p2)  }
   0x8   : > { %v953_v3 = vld [vmem:[%s1225_s1 + $0x80] sm:$0xff] (!%p188_p2)   ;;  %896 = vmatprep.subr.bf16.mxu1 (!%p188_p2), %v952_v2  ;;  %876 = vmatprep.subr.bf16.mxu0 (!%p188_p2), %v954_v4  ;;  %v957_v7 = vld [vmem:[%s1225_s1 + $0x88] sm:$0xff] (!%p188_p2)   ;;  %v961_v12 = vld [vmem:[%s1225_s1 + $0x90] sm:$0xff] (!%p188_p2)  }
   0x9   : > { %897 = vmatpush3.bf16.msra.mxu1 (!%p188_p2), %v953_v3  ;;  %v962_v13 = vld [vmem:[%s1225_s1 + $0x58] sm:$0xff] (!%p188_p2)   ;;  %v966_v17 = vld [vmem:[%s1225_s1 + $0x60] sm:$0xff] (!%p188_p2)   ;;  %v970_v21 = vld [vmem:[%s1225_s1 + $0x68] sm:$0xff] (!%p188_p2)  }
   0xa   : > { %898 = vmatprep.subr.bf16.mxu1 (!%p188_p2), %v956_v6  ;;  %v963_v14 = vld [vmem:[%s1225_s1 + $0x18] sm:$0xff] (!%p188_p2)   ;;  %v967_v18 = vld [vmem:[%s1225_s1 + $0x20] sm:$0xff] (!%p188_p2)   ;;  %v971_v22 = vld [vmem:[%s1225_s1 + $0x28] sm:$0xff] (!%p188_p2)  }
   0xb   : > { %877 = vmatpush3.bf16.msra.mxu0 (!%p188_p2), %v955_v5  ;;  %v964_v15 = vld [vmem:[%s1225_s1 + $0xd8] sm:$0xff] (!%p188_p2)   ;;  %v968_v19 = vld [vmem:[%s1225_s1 + $0xe0] sm:$0xff] (!%p188_p2)   ;;  %v972_v23 = vld [vmem:[%s1225_s1 + $0xe8] sm:$0xff] (!%p188_p2)  }
   0xc   : > { %878 = vmatprep.subr.bf16.mxu0 (!%p188_p2), %v958_v9  ;;  %v965_v16 = vld [vmem:[%s1225_s1 + $0x98] sm:$0xff] (!%p188_p2)   ;;  %v969_v20 = vld [vmem:[%s1225_s1 + $0xa0] sm:$0xff] (!%p188_p2)   ;;  %v973_v24 = vld [vmem:[%s1225_s1 + $0xa8] sm:$0xff] (!%p188_p2)  }
   0xd   : > { %s1231_s19 = smov (!%p214_p3, %s816_s19), 1  ;;  %899 = vmatpush3.bf16.msra.mxu1 %v957_v7  ;;  %v974_v25 = vld [vmem:[%s1225_s1 + $0x70] sm:$0xff]   ;;  %v978_v29 = vld [vmem:[%s1225_s1 + $0x78] sm:$0xff]   ;;  %v983_v36 = vld [vmem:[%s1225_s1 + $0x140] sm:$0xff]  }
   0xe   : > { %s822_s7 = sshll.u32 %s1231_s19, 3  ;;  %900 = vmatprep.subr.bf16.mxu1 %v960_v11  ;;  %s940_s29 = smul.u32 24, %s1231_s19  ;;  %v975_v26 = vld [vmem:[%s1225_s1 + $0x30] sm:$0xff]   ;;  %v979_v30 = vld [vmem:[%s1225_s1 + $0x38] sm:$0xff]   ;;  %v985_v40 = vld [vmem:[%s1225_s1 + $0x100] sm:$0xff]  }
   0xf   : > { %s1075_s12 = scalar_lea.vmem %s1229_s5, %s822_s7  ;;  %879 = vmatpush3.bf16.msra.mxu0 %v959_v10  ;;  %v976_v27 = vld [vmem:[%s1225_s1 + $0xf0] sm:$0xff]   ;;  %v980_v31 = vld [vmem:[%s1225_s1 + $0xf8] sm:$0xff]   ;;  %v986_v42 = vld [vmem:[%s1225_s1 + $0x148] sm:$0xff]  }
  0x10   : > { %754 = vst [vmem:[%s1075_s12] sm:$0xff] %v1009_v8  ;;  %880 = vmatprep.subr.bf16.mxu0 %v962_v13  ;;  %v977_v28 = vld [vmem:[%s1225_s1 + $0xb0] sm:$0xff]   ;;  %s1148_s15 = scalar_lea.vmem %s1224_s0, %s940_s29  ;;  %v982_v34 = vld [vmem:[%s1225_s1 + $0xb8] sm:$0xff]   ;;  %v987_v44 = vld [vmem:[%s1225_s1 + $0x108] sm:$0xff]  }
  0x11   : > { %901 = vmatpush3.bf16.msra.mxu1 %v961_v12  ;;  %v224_v32 = vld [vmem:[%s1148_s15] sm:$0xff]  ;;  %v225_v37 = vld [vmem:[%s1148_s15 + $0x8] sm:$0xff]  ;;  %v988_v45 = vld [vmem:[%s1225_s1 + $0x150] sm:$0xff]  }
  0x12   : > { %902 = vmatprep.subr.bf16.mxu1 %v964_v15  ;;  %v230_v33 = vcombine.high %v224_v32, %v224_v32  ;;  %v236_v35 = vpack.c.bf16 %v224_v32, %v224_v32  ;;  %v231_v39 = vcombine.high %v225_v37, %v225_v37  ;;  %v238_v41 = vpack.c.bf16 %v225_v37, %v225_v37  ;;  %v989_v46 = vld [vmem:[%s1225_s1 + $0x110] sm:$0xff]   ;;  %v990_v47 = vld [vmem:[%s1225_s1 + $0x158] sm:$0xff]   ;;  %v992_v49 = vld [vmem:[%s1225_s1 + $0x160] sm:$0xff]  }
  0x13   : > { %881 = vmatpush3.bf16.msra.mxu0 %v963_v14  ;;  %v991_v48 = vld [vmem:[%s1225_s1 + $0x118] sm:$0xff]   ;;  %v226_v50 = vld [vmem:[%s1148_s15 + $0x10] sm:$0xff]  ;;  %v993_v52 = vld [vmem:[%s1225_s1 + $0x120] sm:$0xff]  }
  0x14   : > { %882 = vmatprep.subr.bf16.mxu0 %v966_v17  ;;  %v237_v38 = vpack.c.bf16 %v230_v33, %v230_v33  ;;  %v239_v43 = vpack.c.bf16 %v231_v39, %v231_v39  ;;  %v232_v51 = vcombine.high %v226_v50, %v226_v50  ;;  %v994_v53 = vld [vmem:[%s1225_s1 + $0x168] sm:$0xff]   ;;  %v996_v56 = vld [vmem:[%s1225_s1 + $0x170] sm:$0xff]   ;;  %v998_v58 = vld [vmem:[%s1225_s1 + $0x178] sm:$0xff]   ;;  %v240_v60 = vpack.c.bf16 %v226_v50, %v226_v50 }
  0x15   : > { %903 = vmatpush3.bf16.msra.mxu1 %v965_v16  ;;  %v995_v55 = vld [vmem:[%s1225_s1 + $0x128] sm:$0xff]   ;;  %v997_v57 = vld [vmem:[%s1225_s1 + $0x130] sm:$0xff]   ;;  %v999_v59 = vld [vmem:[%s1225_s1 + $0x138] sm:$0xff]  }
  0x16   : > { %904 = vmatprep.subr.bf16.mxu1 %v968_v19  ;;  %665 = vmatprep.mubr.bf16.mxu0 %v237_v38  ;;  %v241_v54 = vpack.c.bf16 %v232_v51, %v232_v51  ;;  %v753_v61 = vld [vmem:[%s1228_s4] sm:$0xff] }
  0x17   : > { %883 = vmatpush3.bf16.msra.mxu0 %v967_v18  ;;  %705 = vmatprep.mubr.bf16.mxu1 %v239_v43  ;;  %v755_v62 = vld [vmem:[%s1227_s3] sm:$0x1]  ;;  %v759_v16 = vrot.slane %v753_v61, 1 }
  0x18   : > { %884 = vmatprep.subr.bf16.mxu0 %v970_v21  ;;  %v756_v63 = vadd.f32 %v755_v62, %v753_v61  ;;  %v823_v1 = vld [vmem:[%s1226_s2] ss:$0 sm:$0xff] }
  0x19   : > { %905 = vmatpush3.bf16.msra.mxu1 %v969_v20 }
  0x1a   : > { %906 = vmatprep.subr.bf16.mxu1 %v972_v23  ;;  %757 = vst [vmem:[%s1075_s12] sm:$0x1] %v756_v63 }
  0x1b   : > { %885 = vmatpush3.bf16.msra.mxu0 %v971_v22 }
  0x1c   : > { %886 = vmatprep.subr.bf16.mxu0 %v974_v25 }
  0x1d   : > { %907 = vmatpush3.bf16.msra.mxu1 %v973_v24 }
  0x1e   : > { %908 = vmatprep.subr.bf16.mxu1 %v976_v27 }
  0x1f   : > { %887 = vmatpush3.bf16.msra.mxu0 %v975_v26 }
  0x20   : > { %888 = vmatprep.subr.bf16.mxu0 %v978_v29 }
  0x21   : > { %909 = vmatpush3.bf16.msra.mxu1 %v977_v28 }
  0x22   : > { %910 = vmatprep.subr.bf16.mxu1 %v980_v31 }
  0x23   : > { %889 = vmatpush3.bf16.msra.mxu0 %v979_v30 }
  0x24   : > { %918 = vmatprep.subr.bf16.mxu0 %v983_v36 }
  0x25   : > { %911 = vmatpush3.bf16.msra.mxu1 %v982_v34 }
  0x26   : > { %666 = vmatmul.mubr.bf16.vlgmr.msra.gmra.mrb[0].mxu0 %v236_v35 }
  0x27   : > { %919 = vmatpush3.bf16.msra.mxu0 %v985_v40  ;;  %745 = vmatprep.mubr.bf16.mxu0 %v241_v54 }
  0x28   : > { %706 = vmatmul.mubr.bf16.vlgmr.msra.gmra.mrb[0].mxu1 %v238_v41  ;;  %920 = vmatprep.subr.bf16.mxu0 %v986_v42 }
  0x2b   : > { %921 = vmatpush3.bf16.msra.mxu0 %v987_v44 }
  0x2c   : > { %922 = vmatprep.subr.bf16.mxu0 %v988_v45 }
  0x2f   : > { %923 = vmatpush3.bf16.msra.mxu0 %v989_v46 }
  0x30   : > { %924 = vmatprep.subr.bf16.mxu0 %v990_v47 }
  0x33   : > { %925 = vmatpush3.bf16.msra.mxu0 %v991_v48 }
  0x34   : > { %926 = vmatprep.subr.bf16.mxu0 %v992_v49 }
  0x37   : > { %927 = vmatpush3.bf16.msra.mxu0 %v993_v52 }
  0x38   : > { %928 = vmatprep.subr.bf16.mxu0 %v994_v53 }
  0x3b   : > { %929 = vmatpush3.bf16.msra.mxu0 %v995_v55 }
  0x3c   : > { %930 = vmatprep.subr.bf16.mxu0 %v996_v56 }
  0x3f   : > { %931 = vmatpush3.bf16.msra.mxu0 %v997_v57 }
  0x40   : > { %932 = vmatprep.subr.bf16.mxu0 %v998_v58 }
  0x43   : > { %933 = vmatpush3.bf16.msra.mxu0 %v999_v59 }
  0x46   : > { %746 = vmatmul.mubr.bf16.vlgmr.msra.gmra.mrb[4].mxu0 %v240_v60 }
  0xf9   : > { %v890_v0 = vpop.f32.mrb[0].mxu0 }
  0xfa   : > { %v891_v2 = vpop.f32.mrb[1].mxu0 }
  0xfb   : > { %v892_v3 = vadd.f32 %v891_v2, %v890_v0  ;;  %v893_v4 = vpop.f32.mrb[2].mxu0  ;;  %v912_v5 = vpop.f32.mrb[0].mxu1 }
  0xfc   : > { %v894_v6 = vpop.f32.mrb[3].mxu0  ;;  %v913_v7 = vpop.f32.mrb[1].mxu1 }
  0xfd   : > { %v668_v8 = vadd.f32 %v892_v3, %v823_v1  ;;  %v914_v9 = vadd.f32 %v913_v7, %v912_v5  ;;  %v915_v10 = vpop.f32.mrb[2].mxu1 }
  0xfe   : > { %v916_v11 = vpop.f32.mrb[3].mxu1 }
  0xff   : > { %v708_v12 = vadd.f32 %v914_v9, %v668_v8 }
 0x119   : > { %v934_v13 = vpop.f32.mrb[4].mxu0 }
 0x11a   : > { %v935_v14 = vpop.f32.mrb[5].mxu0 }
 0x11b   : > { %v936_v15 = vadd.f32 %v935_v14, %v934_v13  ;;  %v937_v17 = vpop.f32.mrb[6].mxu0 }
 0x11c   : > { %v938_v18 = vpop.f32.mrb[7].mxu0 }
 0x11d   : > { %v748_v19 = vadd.f32 %v936_v15, %v708_v12 }
 0x11f   : > { %v761_v20 = vadd.f32 %v759_v16, %v748_v19 }
 0x121   : > { %762 = vst [vmem:[%s1075_s12 + $0x1] sm:$0xf] %v761_v20 }
 0x122 PF: > { %s15_s18 = sadd.s32 1, %s1007_s18  }
 0x123   : > { %p12_p4 = scmp.ge.s32.totalorder %s15_s18, 4  }
 0x125   :  { %14 = sbr.rel (!%p12_p4) target bundleno = 1 (0x1), region = 70 }

// kernel: vit_forward.5
= control target key start
LH: loop header
LB: loop body
LE: loop exit
PB: predicated region body
PF: predicated region fallthrough
CT: control target
= control target key end

     0   :  { %vm25_vm0 = vcmask 1041408   ;;  %s341_s0 = inlined_call_operand.vmem [shape: f32[2,128], index: 0, kind: input, shape index: {}]   ;;  %s342_s1 = inlined_call_operand.vmem [shape: f32[1,128], index: 1, kind: input, shape index: {}]   ;;  %s343_s2 = inlined_call_operand.vmem [shape: f32[1,128], index: 2, kind: input, shape index: {}]   ;;  %s344_s3 = inlined_call_operand.vmem [shape: bf16[128,128], index: 3, kind: input, shape index: {}]   ;;  %s345_s4 = inlined_call_operand.vmem [shape: f32[1,128], index: 4, kind: input, shape index: {}]   ;;  %s346_s5 = inlined_call_operand.hbm [shape: f32[2,128], index: 5, kind: output, shape index: {}]  }
   0x1   :  { %v22_v0 = vld [vmem:[%s341_s0] sm:$0x3] }
   0x2   :  { %v26_v1 = vsel %vm25_vm0, %v22_v0, 0.0 }
   0x3   :  { %27 = vadd.xlane.f32.xlu0 %v26_v1 }
   0x4   :  { %10 = vsyncpa [#allocation3], 0  ;;  %v224_v2 = vld [vmem:[%s344_s3] sm:$0xff]   ;;  %v258_v3 = vmov 0.0   ;;  %v225_v4 = vld [vmem:[%s344_s3 + $0x8] sm:$0xff]   ;;  %vm259_vm1 = vmmov 0  }
   0x5   :  { %201 = vmatprep.subr.bf16.mxu0 %v258_v3  ;;  %v226_v10 = vld [vmem:[%s344_s3 + $0x10] sm:$0xff]   ;;  %v227_v11 = vld [vmem:[%s344_s3 + $0x18] sm:$0xff]   ;;  %v228_v12 = vld [vmem:[%s344_s3 + $0x20] sm:$0xff]   ;;  %217 = vmatprep.mubr.msk.bf16.mxu0 %vm259_vm1, %v258_v3  ;;  %s260_s15 = smov [#allocation2]  }
   0x6   :  { %202 = vmatpush3.bf16.msra.mxu0 %v224_v2  ;;  %v229_v13 = vld [vmem:[%s344_s3 + $0x28] sm:$0xff]   ;;  %v230_v14 = vld [vmem:[%s344_s3 + $0x30] sm:$0xff]   ;;  %v231_v15 = vld [vmem:[%s344_s3 + $0x38] sm:$0xff]   ;;  %s173_s16 = sshll.u32 %s260_s15, 4  ;;  %s174_s16 = int_to_ptr.vmem [resolvable:$true] %s173_s16 }
   0x7   :  { %203 = vmatprep.subr.bf16.mxu0 %v258_v3  ;;  %v181_v20 = vld [vmem:[%s342_s1] ss:$0 sm:$0xff]  ;;  %s234_s1 = scalar_lea.vmem %s174_s16, 32  ;;  %p239_p1 = scmp.lt.s32.totalorder %s174_s16, %s174_s16 }
   0x8   :  { %v182_v22 = vld [vmem:[%s343_s2] ss:$0 sm:$0xff]  ;;  %p235_p0 = scmp.ne.s32.totalorder %s174_s16, %s234_s1  ;;  %p240_p2 = scmp.lt.s32.totalorder %s234_s1, %s234_s1 }
   0x9   :  { %v183_v26 = vld [vmem:[%s345_s4] ss:$0 sm:$0xff] }
   0xa   :  { %204 = vmatpush3.bf16.msra.mxu0 %v225_v4  ;;  %p241_p3 = por %p240_p2, %p239_p1 }
   0xb   :  { %205 = vmatprep.subr.bf16.mxu0 %v258_v3 }
   0xc   :  { %p242_p4 = pnand %p241_p3, %p235_p0 }
   0xe   :  { %206 = vmatpush3.bf16.msra.mxu0 %v226_v10 }
   0xf   :  { %207 = vmatprep.subr.bf16.mxu0 %v258_v3 }
  0x12   :  { %208 = vmatpush3.bf16.msra.mxu0 %v227_v11 }
  0x13   :  { %209 = vmatprep.subr.bf16.mxu0 %v258_v3 }
  0x16   :  { %210 = vmatpush3.bf16.msra.mxu0 %v228_v12 }
  0x17   :  { %211 = vmatprep.subr.bf16.mxu0 %v258_v3 }
  0x1a   :  { %212 = vmatpush3.bf16.msra.mxu0 %v229_v13 }
  0x1b   :  { %213 = vmatprep.subr.bf16.mxu0 %v258_v3 }
  0x1e   :  { %214 = vmatpush3.bf16.msra.mxu0 %v230_v14 }
  0x1f   :  { %215 = vmatprep.subr.bf16.mxu0 %v258_v3 }
  0x22   :  { %216 = vmatpush3.bf16.msra.mxu0 %v231_v15 }
  0x90   :  { %v28_v5 = vpop.xlane.xlu0 %27 }
  0x91   :  { %v30_v6 = vmul.f32 0.0078125, %v28_v5 }
  0x93   :  { %v31_v7 = vsub.f32 %v22_v0, %v30_v6 }
  0x95   :  { %v32_v8 = vmul.f32 %v31_v7, %v31_v7 }
  0x97   :  { %v33_v9 = vsel %vm25_vm0, %v32_v8, 0.0 }
  0x98   :  { %34 = vadd.xlane.f32.xlu0 %v33_v9 }
 0x125   :  { %v35_v16 = vpop.xlane.xlu0 %34 }
 0x126   :  { %v36_v17 = vmul.f32 0.0078125, %v35_v16 }
 0x128   :  { %v37_v18 = vadd.f32 1e-06, %v36_v17 }
 0x12a   :  { %232 = vrsqrt.f32 %v37_v18 }
 0x134   :  { %v233_v19 = vpop.eup %232 }
 0x135   :  { %v39_v21 = vmul.f32 %v233_v19, %v31_v7 }
 0x137   :  { %v46_v23 = vmul.f32 %v181_v20, %v39_v21 }
 0x139   :  { %v53_v24 = vadd.f32 %v182_v22, %v46_v23 }
 0x13b   :  { %v54_v25 = vpack.c.bf16 %v53_v24, %v53_v24 }
 0x13d   :  { %218 = vmatmul.mubr.bf16.vlgmr.msra.gmra.mrb[0].mxu0 %v54_v25 }
 0x210   :  { %v160_v27 = vpop.f32.mrb[0].mxu0 }
 0x211   :  { %v161_v28 = vadd.f32 %v183_v26, %v160_v27  ;;  %v219_v29 = vpop.f32.mrb[1].mxu0 }
 0x212   :  { %v163_v30 = vpop.f32.mrb[2].mxu0 }
 0x213   :  { %166 = vst [vmem:[#allocation2] sm:$0x3] %v161_v28  ;;  %v220_v31 = vpop.f32.mrb[3].mxu0 }
 0x214   :  { %245 = shalt.err (!%p242_p4)
}
 0x215   :  { %s246_s4 = scalar_lea.hbm %s346_s5, 32 }
 0x216   :  { %p247_p5 = scmp.ne.s32.totalorder %s346_s5, %s246_s4  ;;  %p250_p6 = scmp.lt.u32.totalorder %s246_s4, %s346_s5 }
 0x218   :  { %p252_p7 = pnand %p250_p6, %p247_p5 }
 0x21a   :  { %255 = shalt.err (!%p252_p7)
}
 0x21b   :  { %176 = dma.vmem_to_hbm [thread:$0]  %s174_s16, 32, %s346_s5, [#allocation3]  }
 0x21c   :  { %256 = dma.done.wait [#allocation3], 32  }
 0x21d   :  { %257 = vsyncadd [#allocation3], 4294967264 }
 0x21e   :  { %180 = vsyncpa [#allocation3], 1 }

// kernel: vit_forward.4
= control target key start
LH: loop header
LB: loop body
LE: loop exit
PB: predicated region body
PF: predicated region fallthrough
CT: control target
= control target key end

     0   :  { %s2905_s27 = smov 0   ;;  %s2907_s28 = smov 0   ;;  %s3261_s0 = inlined_call_operand.vmem [shape: f32[2,8,128], index: 0, kind: input, shape index: {}, may-alias: {0,8}]   ;;  %s3262_s1 = inlined_call_operand.vmem [shape: bf16[2,128,384], index: 1, kind: input, shape index: {}]   ;;  %s3263_s2 = inlined_call_operand.vmem [shape: f32[2,1,384], index: 2, kind: input, shape index: {}]   ;;  %s3264_s3 = inlined_call_operand.vmem [shape: bf16[2,128,128], index: 3, kind: input, shape index: {}]   ;;  %s3265_s4 = inlined_call_operand.vmem [shape: f32[2,6,128], index: 4, kind: input, shape index: {}]   ;;  %s3266_s5 = inlined_call_operand.vmem [shape: bf16[2,128,512], index: 5, kind: input, shape index: {}]   ;;  %s3267_s6 = inlined_call_operand.vmem [shape: f32[2,1,512], index: 6, kind: input, shape index: {}]   ;;  %s3268_s7 = inlined_call_operand.vmem [shape: bf16[2,512,128], index: 7, kind: input, shape index: {}]   ;;  %s3269_s8 = inlined_call_operand.vmem [shape: f32[2,8,128], index: 8, kind: output, shape index: {}, may-alias: {0,8}]  }
   0x1   :  { %s2909_s29 = smov 0   ;;  %s2911_s30 = smov 0  }
   0x2   :  { %s2913_s9 = smov 0  }
   0x3 LB: > { %s27_s10 = sadd.s32 1, %s2844_s29  ;;  %s30_s11 = sadd.s32 1, %s2848_s30  ;;  %s2852_s9 = sphi %s2913_s9, %s18_s9   ;;  %s2848_s30 = sphi %s2911_s30, %s3273_s30   ;;  %s2844_s29 = sphi %s2909_s29, %s3272_s29   ;;  %s2840_s28 = sphi %s2907_s28, %s3271_s28   ;;  %s2836_s27 = sphi %s2905_s27, %s3270_s27  }
   0x4   : > { %p28_p0 = scmp.ge.s32.totalorder %s27_s10, 2  ;;  %p2316_p1 = scmp.ge.s32.totalorder %s2852_s9, 1 }
   0x5   : > { %p273_p2 = scmp.lt.s32.totalorder %s2852_s9, 5 }
   0x6   : > { %s3275_s10 = smov (%p28_p0, %s27_s10), 0  ;;  %s3277_s11 = smov (!%p28_p0, %s30_s11), %s2848_s30 }
   0x7   : > { %p274_p3 = pnand %p2316_p1, %p273_p2  ;;  %p32_p4 = scmp.ge.s32.totalorder %s3277_s11, 2 }
   0x8   : > { %p305_p5 = scmp.lt.s32.totalorder (!%p274_p3), %s2840_s28, 1  ;;  %p2319_p6 = scmp.ne.s32.totalorder (!%p274_p3), %s2836_s27, 0 }
   0x9   : > { %s3279_s11 = smov (%p32_p4, %s3277_s11), 0  ;;  %277 = sbr.rel (%p274_p3) target bundleno = 3693 (0xe6d), region = 52 }
  0x10   : > { %s3281_s28 = smov (!%p305_p5, %s2840_s28), 1  ;;  %317 = sbr.rel (%p2319_p6) target bundleno = 23 (0x17), region = 56 }
  0x11   : > { %s2317_s12 = sshll.u32 %s3281_s28, 3 }
  0x12   : > { %s308_s15 = scalar_lea.vmem %s3261_s0, %s2317_s12  ;;  %s2943_s18 = scalar_lea.vmem %s3269_s8, %s2317_s12 }
  0x13   : > { %v318_v0 = vld [vmem:[%s308_s15] sm:$0xff] (!%p2319_p6) }
  0x14   : > { %319 = vst [vmem:[%s2943_s18] sm:$0xff] (!%p2319_p6), %v318_v0 }
  0x17 PF: > { %s2442_s19 = smul.u32 192, %s2836_s27  ;;  %v2854_v2 = vmov 0.0   ;;  %v2855_v26 = vmov 0   ;;  %vm2856_vm0 = vmmov 0   ;;  %v336_v34 = vlaneseq  ;;  %s2320_s23 = sshll.u32 %s2836_s27, 3 }
  0x18   : > { %2527 = vmatprep.subr.bf16.mxu1 %v2854_v2  ;;  %561 = vmatprep.mubr.bf16.mxu0 %v2855_v26  ;;  %s3001_s26 = scalar_lea.vmem %s3265_s4, %s2320_s23  ;;  %s382_s28 = smul.u32 3, %s2836_s27  ;;  %vm632_vm1 = vcmask 261120   ;;  %vm710_vm3 = vcmask 64512  }
  0x19   : > { %s2956_s22 = scalar_lea.vmem %s3262_s1, %s2442_s19  ;;  %2543 = vmatprep.mubr.msk.bf16.mxu1 %vm2856_vm0, %v2854_v2  ;;  %v2996_v36 = vshrl.u32 %v336_v34, 7  ;;  %v3007_v38 = vld [vmem:[%s3001_s26] sm:$0x3f]  ;;  %s2857_s15 = smov 96  }
  0x1a   : > { %v2665_v3 = vld [vmem:[%s2956_s22 + $0x4] ss:$12 sps:$4 sm:$0xff]   ;;  %v2667_v4 = vld [vmem:[%s2956_s22] ss:$12 sps:$4 sm:$0xff]   ;;  %v2668_v5 = vld [vmem:[%s2956_s22 + $0x8] ss:$12 sps:$4 sm:$0xff]   ;;  %s383_s14 = scalar_lea.vmem %s3263_s2, %s382_s28 }
  0x1b   : > { %v2948_v1 = vld [vmem:[%s2943_s18] sm:$0xff]  ;;  %529 = vmatprep.subr.bf16.mxu0 %v2665_v3  ;;  %v2669_v6 = vld [vmem:[%s2956_s22 + $0x1c] ss:$12 sps:$4 sm:$0xff]   ;;  %2528 = vmatpush3.bf16.msra.mxu1 %v2668_v5  ;;  %v2677_v16 = vld [vmem:[%s2956_s22 + $0x4c] ss:$12 sps:$4 sm:$0xff]   ;;  %v3004_v37 = vsub.s32 0, %v2996_v36 }
  0x1c   : > { %324 = vadd.xlane.f32.xlu0 %v2948_v1  ;;  %530 = vmatpush1.bf16.msra.mxu0 %v2667_v4  ;;  %v2671_v7 = vld [vmem:[%s2956_s22 + $0x18] ss:$12 sps:$4 sm:$0xff]   ;;  %v2672_v8 = vld [vmem:[%s2956_s22 + $0x20] ss:$12 sps:$4 sm:$0xff]   ;;  %v2675_v14 = vld [vmem:[%s2956_s22 + $0x30] ss:$12 sps:$4 sm:$0xff]  }
  0x1d   : > { %531 = vmatprep.subr.bf16.mxu0 %v2669_v6  ;;  %2529 = vmatprep.subr.bf16.mxu1 %v2854_v2  ;;  %v2673_v9 = vld [vmem:[%s2956_s22 + $0x34] ss:$12 sps:$4 sm:$0xff]   ;;  %v2676_v15 = vld [vmem:[%s2956_s22 + $0x38] ss:$12 sps:$4 sm:$0xff]   ;;  %v2680_v18 = vld [vmem:[%s2956_s22 + $0x50] ss:$12 sps:$4 sm:$0xff]   ;;  %v339_v40 = vrot.slane %v3007_v38, %v3004_v37 }
  0x1e   : > { %v2679_v17 = vld [vmem:[%s2956_s22 + $0x48] ss:$12 sps:$4 sm:$0xff]   ;;  %v2681_v19 = vld [vmem:[%s2956_s22 + $0x64] ss:$12 sps:$4 sm:$0xff]   ;;  %v2683_v20 = vld [vmem:[%s2956_s22 + $0x60] ss:$12 sps:$4 sm:$0xff]  }
  0x1f   : > { %2530 = vmatpush3.bf16.msra.mxu1 %v2672_v8  ;;  %v2684_v21 = vld [vmem:[%s2956_s22 + $0x68] ss:$12 sps:$4 sm:$0xff]   ;;  %v2687_v23 = vld [vmem:[%s2956_s22 + $0x78] ss:$12 sps:$4 sm:$0xff]   ;;  %v2688_v24 = vld [vmem:[%s2956_s22 + $0x80] ss:$12 sps:$4 sm:$0xff]  }
  0x20   : > { %532 = vmatpush1.bf16.msra.mxu0 %v2671_v7  ;;  %2531 = vmatprep.subr.bf16.mxu1 %v2854_v2  ;;  %v2685_v22 = vld [vmem:[%s2956_s22 + $0x7c] ss:$12 sps:$4 sm:$0xff]   ;;  %v2689_v25 = vld [vmem:[%s2956_s22 + $0x94] ss:$12 sps:$4 sm:$0xff]   ;;  %v2692_v28 = vld [vmem:[%s2956_s22 + $0x98] ss:$12 sps:$4 sm:$0xff]  }
  0x21   : > { %533 = vmatprep.subr.bf16.mxu0 %v2673_v9  ;;  %v2691_v27 = vld [vmem:[%s2956_s22 + $0x90] ss:$12 sps:$4 sm:$0xff]   ;;  %v2693_v29 = vld [vmem:[%s2956_s22 + $0xac] ss:$12 sps:$4 sm:$0xff]   ;;  %v2695_v30 = vld [vmem:[%s2956_s22 + $0xa8] ss:$12 sps:$4 sm:$0xff]  }
  0x22   : > { %v2696_v31 = vld [vmem:[%s2956_s22 + $0xb0] ss:$12 sps:$4 sm:$0xff]   ;;  %v3010_v39 = vsub.s32 1, %v2996_v36  ;;  %v384_v47 = vld [vmem:[%s383_s14] sm:$0x7]  ;;  %v3025_v48 = vsub.s32 2, %v2996_v36 }
  0x23   : > { %2532 = vmatpush3.bf16.msra.mxu1 %v2676_v15  ;;  %v389_v52 = vrot.slane %v384_v47, %v3004_v37  ;;  %v3054_v3 = vand.u32 127, %v336_v34  ;;  %s2858_s16 = smov 64   ;;  %s2443_s17 = sshll.u32 %s2836_s27, 6 }
  0x24   : > { %534 = vmatpush1.bf16.msra.mxu0 %v2675_v14  ;;  %2533 = vmatprep.subr.bf16.mxu1 %v2854_v2  ;;  %v344_v43 = vrot.slane %v3007_v38, %v3010_v39  ;;  %v393_v49 = vrot.slane %v384_v47, %v3010_v39  ;;  %v397_v55 = vrot.slane %v384_v47, %v3025_v48  ;;  %s3075_s21 = scalar_lea.vmem %s3264_s3, %s2443_s17  ;;  %s2859_s22 = smov 32  }
  0x25   : > { %535 = vmatprep.subr.bf16.mxu0 %v2677_v16  ;;  %vm612_vm2 = vcmp.lt.s32.totalorder %v3054_v3, 5  ;;  %v2703_v3 = vld [vmem:[%s3075_s21 + $0x30] sm:$0xff]   ;;  %s2444_s23 = sshll.u32 %s2836_s27, 8 }
  0x26   : > { %s3155_s28 = scalar_lea.vmem %s3266_s5, %s2444_s23  ;;  %s3172_s14 = scalar_lea.vmem %s3268_s7, %s2444_s23 }
  0x27   : > { %2534 = vmatpush3.bf16.msra.mxu1 %v2680_v18 }
  0x28   : > { %536 = vmatpush1.bf16.msra.mxu0 %v2679_v17  ;;  %2535 = vmatprep.subr.bf16.mxu1 %v2854_v2 }
  0x29   : > { %537 = vmatprep.subr.bf16.mxu0 %v2681_v19 }
  0x2b   : > { %2536 = vmatpush3.bf16.msra.mxu1 %v2684_v21 }
  0x2c   : > { %538 = vmatpush1.bf16.msra.mxu0 %v2683_v20  ;;  %2537 = vmatprep.subr.bf16.mxu1 %v2854_v2 }
  0x2d   : > { %539 = vmatprep.subr.bf16.mxu0 %v2685_v22 }
  0x2f   : > { %2538 = vmatpush3.bf16.msra.mxu1 %v2688_v24 }
  0x30   : > { %540 = vmatpush1.bf16.msra.mxu0 %v2687_v23  ;;  %2539 = vmatprep.subr.bf16.mxu1 %v2854_v2 }
  0x31   : > { %541 = vmatprep.subr.bf16.mxu0 %v2689_v25  ;;  %v2699_v25 = vld [vmem:[%s3075_s21 + $0x10] sm:$0xff]  }
  0x33   : > { %2540 = vmatpush3.bf16.msra.mxu1 %v2692_v28 }
  0x34   : > { %542 = vmatpush1.bf16.msra.mxu0 %v2691_v27  ;;  %2541 = vmatprep.subr.bf16.mxu1 %v2854_v2  ;;  %v2700_v27 = vld [vmem:[%s3075_s21 + $0x18] sm:$0xff]  }
  0x35   : > { %543 = vmatprep.subr.bf16.mxu0 %v2693_v29 }
  0x37   : > { %2542 = vmatpush3.bf16.msra.mxu1 %v2696_v31  ;;  %v2697_v31 = vld [vmem:[%s3075_s21] sm:$0xff]  }
  0x38   : > { %544 = vmatpush1.bf16.msra.mxu0 %v2695_v30  ;;  %2547 = vmatprep.subr.mxu1 %v2854_v2 }
  0x39   : > { %2557 = vmatprep.subr.mxu0 %v2854_v2 }
  0xa9   : > { %v325_v10 = vpop.xlane.xlu0 %324 }
  0xaa   : > { %v327_v11 = vmul.f32 0.0078125, %v325_v10 }
  0xac   : > { %v328_v12 = vsub.f32 %v2948_v1, %v327_v11 }
  0xae   : > { %v329_v13 = vmul.f32 %v328_v12, %v328_v12 }
  0xb0   : > { %330 = vadd.xlane.f32.xlu0 %v329_v13 }
 0x13d   : > { %v331_v32 = vpop.xlane.xlu0 %330 }
 0x13e   : > { %v332_v33 = vmul.f32 0.0078125, %v331_v32 }
 0x140   : > { %v333_v35 = vadd.f32 1e-06, %v332_v33  ;;  %v2698_v33 = vld [vmem:[%s3075_s21 + $0x8] sm:$0xff]  }
 0x142   : > { %2785 = vrsqrt.f32 %v333_v35 }
 0x14c   : > { %v2786_v41 = vpop.eup %2785 }
 0x14d   : > { %v335_v42 = vmul.f32 %v2786_v41, %v328_v12 }
 0x14f   : > { %v340_v44 = vmul.f32 %v339_v40, %v335_v42 }
 0x151   : > { %v345_v45 = vadd.f32 %v344_v43, %v340_v44 }
 0x153   : > { %v346_v46 = vpack.c.bf16 %v345_v45, %v345_v45 }
 0x155   : > { %562 = vmatmul.mubr.bf16.vlgmr.msra.gmra.mrb[0].mxu0 %v346_v46  ;;  %2544 = vmatmul.mubr.bf16.vlgmr.msra.gmra.mrb[0].mxu1 %v346_v46 }
 0x156   : > { %2549 = vmatprep.mubr.msk.f32.mxu1 %vm2856_vm0, %v2854_v2  ;;  %2559 = vmatprep.mubr.msk.f32.mxu0 %vm2856_vm0, %v2854_v2 }
 0x228   : > { %v563_v50 = vpop.f32.mrb[0].mxu0  ;;  %v604_v51 = vpop.f32.mrb[0].mxu1 }
 0x229   : > { %v565_v53 = vpop.f32.mrb[1].mxu0  ;;  %v2545_v54 = vpop.f32.mrb[1].mxu1  ;;  %v3036_v61 = vadd.f32 %v563_v50, %v389_v52  ;;  %v3039_v62 = vadd.f32 %v604_v51, %v397_v55 }
 0x22a   : > { %v3030_v56 = vadd.f32 %v565_v53, %v393_v49  ;;  %v567_v57 = vpop.f32.mrb[2].mxu0  ;;  %v607_v58 = vpop.f32.mrb[2].mxu1 }
 0x22b   : > { %v568_v59 = vpop.f32.mrb[3].mxu0  ;;  %v2546_v60 = vpop.f32.mrb[3].mxu1 }
 0x22c   : > { %798 = vrot.lane.b32.xlu1 %v3030_v56, %s2857_s15  ;;  %2548 = vmatpush3.xpose.msk.msra.mxu1 %vm632_vm1, %v3030_v56 }
 0x22d   : > { %2552 = vmatprep.subr.mxu1 %v2854_v2 }
 0x22f   : > { %2550 = vmatmul.mubr.msk.f32.vlgmr.msra.gmra.mrb[4].mxu1 %vm632_vm1, %v3036_v61 }
 0x230   : > { %796 = vrot.lane.b32.xlu1 %v3036_v61, %s2857_s15  ;;  %2553 = vmatpush3.msra.mxu1 %v3039_v62 }
 0x231   : > { %2554 = vmatprep.mubr.msk.f32.mxu1 %vm2856_vm0, %v2854_v2  ;;  %2562 = vmatprep.subr.mxu1 %v2854_v2 }
 0x29e   : > { %v799_v63 = vpop.permute.xlu1 %798 }
 0x29f   : > { %2558 = vmatpush3.xpose.msk.msra.mxu0 %vm632_vm1, %v799_v63 }
 0x2a0   : > { %2567 = vmatprep.subr.bf16.mxu0 %v2854_v2 }
 0x2a2   : > { %v797_v0 = vpop.permute.xlu1 %796 }
 0x2a3   : > { %2560 = vmatmul.mubr.msk.f32.vlgmr.msra.gmra.mrb[4].mxu0 %vm632_vm1, %v797_v0 }
 0x2a4   : > { %2571 = vmatprep.mubr.msk.bf16.mxu0 %vm2856_vm0, %v2854_v2  ;;  %2568 = vmatpush3.bf16.msra.mxu0 %v2699_v25 }
 0x2a5   : > { %2569 = vmatprep.subr.bf16.mxu0 %v2854_v2 }
 0x2a8   : > { %2570 = vmatpush3.bf16.msra.mxu0 %v2700_v27 }
 0x2a9   : > { %2583 = vmatprep.subr.mxu0 %v2854_v2 }
 0x302   : > { %v705_v4 = vpop.f32.mrb[4].mxu1 }
 0x303   : > { %v709_v5 = vsel %vm612_vm2, %v705_v4, -1e+30  ;;  %v2551_v6 = vpop.f32.mrb[5].mxu1 }
 0x304   : > { %v711_v7 = vsel %vm710_vm3, %v709_v5, -inf }
 0x305   : > { %712 = vmax.xlane.f32.xlu0 %v711_v7 }
 0x376   : > { %v870_v8 = vpop.f32.mrb[4].mxu0 }
 0x377   : > { %v874_v9 = vsel %vm612_vm2, %v870_v8, -1e+30  ;;  %v2561_v10 = vpop.f32.mrb[5].mxu0  ;;  %v2701_v8 = vld [vmem:[%s3075_s21 + $0x20] sm:$0xff]  }
 0x378   : > { %v875_v11 = vsel %vm710_vm3, %v874_v9, -inf }
 0x379   : > { %876 = vmax.xlane.f32.xlu1 %v875_v11 }
 0x38a   : > { %1074 = vrot.lane.b32.xlu1 %v3036_v61, %s2858_s16 }
 0x392   : > { %v713_v12 = vpop.xlane.xlu0 %712 }
 0x393   : > { %v714_v13 = vsub.f32 %v709_v5, %v713_v12  ;;  %v2702_v12 = vld [vmem:[%s3075_s21 + $0x28] sm:$0xff]  }
 0x395   : > { %v715_v14 = vmul.f32 1.442695, %v714_v13 }
 0x397   : > { %2787 = vpow2.f32 %v715_v14 }
 0x3a1   : > { %v2788_v15 = vpop.eup %2787 }
 0x3a2   : > { %v717_v16 = vsel %vm710_vm3, %v2788_v15, 0.0 }
 0x3a3   : > { %718 = vadd.xlane.f32.xlu0 %v717_v16 }
 0x406   : > { %v877_v17 = vpop.xlane.xlu1 %876 }
 0x407   : > { %v878_v18 = vsub.f32 %v874_v9, %v877_v17 }
 0x409   : > { %v879_v19 = vmul.f32 1.442695, %v878_v18 }
 0x40a   : > { %v1075_v45 = vpop.permute.xlu1 %1074 }
 0x40b   : > { %2789 = vpow2.f32 %v879_v19 }
 0x415   : > { %v2790_v20 = vpop.eup %2789 }
 0x416   : > { %v881_v21 = vsel %vm710_vm3, %v2790_v20, 0.0 }
 0x417   : > { %882 = vadd.xlane.f32.xlu0 %v881_v21 }
 0x42d   : > { %887 = vrot.lane.b32.xlu0 %v3039_v62, %s2857_s15  ;;  %s2374_s15 = sshll.u32 %s2836_s27, 2 }
 0x42e   : > { %s1584_s19 = scalar_lea.vmem %s3267_s6, %s2374_s15 }
 0x430   : > { %v719_v22 = vpop.xlane.xlu0 %718 }
 0x431   : > { %2791 = vrcp.f32 %v719_v22  ;;  %1076 = vrot.lane.b32.xlu0 %v3030_v56, %s2858_s16 }
 0x43b   : > { %v2792_v23 = vpop.eup %2791 }
 0x43c   : > { %v721_v24 = vmul.f32 %v2792_v23, %v2788_v15 }
 0x43e   : > { %2555 = vmatmul.mubr.msk.f32.vlgmr.msra.gmra.mrb[6].mxu1 %vm710_vm3, %v721_v24 }
 0x43f   : > { %2564 = vmatprep.mubr.msk.f32.mxu1 %vm2856_vm0, %v2854_v2 }
 0x4a4   : > { %v883_v28 = vpop.xlane.xlu0 %882 }
 0x4a5   : > { %2793 = vrcp.f32 %v883_v28 }
 0x4a8   : > { %v888_v29 = vpop.permute.xlu0 %887 }
 0x4a9   : > { %2563 = vmatpush3.msra.mxu1 %v888_v29 }
 0x4aa   : > { %2575 = vmatprep.subr.bf16.mxu1 %v2854_v2 }
 0x4ac   : > { %v1077_v44 = vpop.permute.xlu0 %1076 }
 0x4af   : > { %v2794_v30 = vpop.eup %2793 }
 0x4b0   : > { %v885_v32 = vmul.f32 %v2794_v30, %v2790_v20 }
 0x4b2   : > { %2565 = vmatmul.mubr.msk.f32.vlgmr.msra.gmra.mrb[8].mxu1 %vm710_vm3, %v885_v32 }
 0x4b3   : > { %2576 = vmatpush3.bf16.msra.mxu1 %v2697_v31  ;;  %2579 = vmatprep.mubr.msk.bf16.mxu1 %vm2856_vm0, %v2854_v2 }
 0x4b4   : > { %2577 = vmatprep.subr.bf16.mxu1 %v2854_v2 }
 0x4b7   : > { %2578 = vmatpush3.bf16.msra.mxu1 %v2698_v33 }
 0x4b8   : > { %2588 = vmatprep.subr.mxu1 %v2854_v2 }
 0x511   : > { %v791_v34 = vpop.f32.mrb[6].mxu1 }
 0x512   : > { %v795_v35 = vpack.c.bf16 %v791_v34, %v791_v34  ;;  %v2556_v40 = vpop.f32.mrb[7].mxu1  ;;  %v2704_v34 = vld [vmem:[%s3075_s21 + $0x38] sm:$0xff]  }
 0x514   : > { %2580 = vmatmul.mubr.msk.bf16.vlgmr.msra.gmra.mrb[12].mxu1 %vm632_vm1, %v795_v35 }
 0x515   : > { %2590 = vmatprep.mubr.msk.f32.mxu1 %vm2856_vm0, %v2854_v2 }
 0x585   : > { %v959_v41 = vpop.f32.mrb[8].mxu1 }
 0x586   : > { %v963_v42 = vpack.c.bf16 %v959_v41, %v959_v41  ;;  %v2566_v43 = vpop.f32.mrb[9].mxu1 }
 0x588   : > { %2572 = vmatmul.mubr.msk.bf16.vlgmr.msra.gmra.mrb[8].mxu0 %vm632_vm1, %v963_v42 }
 0x589   : > { %2584 = vmatpush3.xpose.msk.msra.mxu0 %vm632_vm1, %v1077_v44  ;;  %2585 = vmatprep.mubr.msk.f32.mxu0 %vm2856_vm0, %v2854_v2  ;;  %v1524_v44 = vrot.slane %v3007_v38, %v3025_v48 }
 0x58a   : > { %2593 = vmatprep.subr.bf16.mxu0 %v2854_v2 }
 0x590   : > { %2586 = vmatmul.mubr.msk.f32.vlgmr.msra.gmra.mrb[6].mxu0 %vm632_vm1, %v1075_v45 }
 0x591   : > { %2597 = vmatprep.mubr.msk.bf16.mxu0 %vm2856_vm0, %v2854_v2  ;;  %2594 = vmatpush3.bf16.msra.mxu0 %v2701_v8  ;;  %v2723_v8 = vld [vmem:[%s3155_s28 + $0x60] ss:$16 sps:$4 sm:$0xff]  }
 0x592   : > { %2595 = vmatprep.subr.bf16.mxu0 %v2854_v2 }
 0x595   : > { %2596 = vmatpush3.bf16.msra.mxu0 %v2702_v12  ;;  %v2737_v12 = vld [vmem:[%s3155_s28 + $0xa4] ss:$16 sps:$4 sm:$0xff]  }
 0x596   : > { %2611 = vmatprep.subr.bf16.mxu0 %v2854_v2 }
 0x5e7   : > { %v1068_v46 = vpop.f32.mrb[12].mxu1 }
 0x5e8   : > { %v2581_v47 = vpop.f32.mrb[13].mxu1 }
 0x5e9   : > { %v1071_v49 = vpop.f32.mrb[14].mxu1 }
 0x5ea   : > { %v2582_v50 = vpop.f32.mrb[15].mxu1 }
 0x5eb   : > { %v2708_v50 = vld [vmem:[%s3155_s28 + $0x8] ss:$16 sps:$4 sm:$0xff]  }
 0x65b   : > { %v1013_v51 = vpop.f32.mrb[8].mxu0 }
 0x65c   : > { %v3103_v52 = vadd.f32 %v1068_v46, %v1013_v51  ;;  %v2573_v53 = vpop.f32.mrb[9].mxu0  ;;  %v2710_v51 = vld [vmem:[%s3155_s28 + $0xc] ss:$16 sps:$4 sm:$0xff]  }
 0x65d   : > { %v1016_v54 = vpop.f32.mrb[10].mxu0  ;;  %v2713_v53 = vld [vmem:[%s3155_s28 + $0x24] ss:$16 sps:$4 sm:$0xff]  }
 0x65e   : > { %v2574_v55 = vpop.f32.mrb[11].mxu0  ;;  %v2714_v54 = vld [vmem:[%s3155_s28 + $0x28] ss:$16 sps:$4 sm:$0xff]  }
 0x65f   : > { %v2716_v55 = vld [vmem:[%s3155_s28 + $0x2c] ss:$16 sps:$4 sm:$0xff]  }
 0x663   : > { %v1148_v57 = vpop.f32.mrb[6].mxu0 }
 0x664   : > { %v1152_v58 = vsel %vm612_vm2, %v1148_v57, -1e+30  ;;  %v2587_v59 = vpop.f32.mrb[7].mxu0  ;;  %v2717_v57 = vld [vmem:[%s3155_s28 + $0x40] ss:$16 sps:$4 sm:$0xff]  }
 0x665   : > { %v1153_v60 = vsel %vm710_vm3, %v1152_v58, -inf  ;;  %v2720_v59 = vld [vmem:[%s3155_s28 + $0x48] ss:$16 sps:$4 sm:$0xff]  }
 0x666   : > { %1154 = vmax.xlane.f32.xlu0 %v1153_v60  ;;  %v2722_v60 = vld [vmem:[%s3155_s28 + $0x4c] ss:$16 sps:$4 sm:$0xff]  }
 0x67c   : > { %1164 = vrot.lane.b32.xlu0 %v3039_v62, %s2858_s16 }
 0x680   : > { %1297 = vrot.lane.b32.xlu0 %v3036_v61, %s2859_s22 }
 0x6f3   : > { %v1155_v63 = vpop.xlane.xlu0 %1154 }
 0x6f4   : > { %v1156_v0 = vsub.f32 %v1152_v58, %v1155_v63  ;;  %v2719_v58 = vld [vmem:[%s3155_s28 + $0x44] ss:$16 sps:$4 sm:$0xff]  }
 0x6f6   : > { %v1157_v4 = vmul.f32 1.442695, %v1156_v0 }
 0x6f7   : > { %v1165_v5 = vpop.permute.xlu0 %1164 }
 0x6f8   : > { %2795 = vpow2.f32 %v1157_v4  ;;  %2589 = vmatpush3.msra.mxu1 %v1165_v5 }
 0x6f9   : > { %2601 = vmatprep.subr.mxu1 %v2854_v2 }
 0x702   : > { %v2796_v6 = vpop.eup %2795 }
 0x703   : > { %v1159_v7 = vsel %vm710_vm3, %v2796_v6, 0.0 }
 0x704   : > { %1160 = vadd.xlane.f32.xlu1 %v1159_v7  ;;  %v2728_v7 = vld [vmem:[%s3155_s28 + $0x6c] ss:$16 sps:$4 sm:$0xff]  }
 0x715   : > { %1299 = vrot.lane.b32.xlu1 %v3030_v56, %s2859_s22  ;;  %v1298_v56 = vpop.permute.xlu0 %1297 }
 0x791   : > { %v1161_v61 = vpop.xlane.xlu1 %1160 }
 0x792   : > { %2797 = vrcp.f32 %v1161_v61  ;;  %v2726_v61 = vld [vmem:[%s3155_s28 + $0x68] ss:$16 sps:$4 sm:$0xff]  }
 0x795   : > { %v1300_v11 = vpop.permute.xlu1 %1299 }
 0x79c   : > { %v2798_v9 = vpop.eup %2797 }
 0x79d   : > { %v1163_v10 = vmul.f32 %v2798_v9, %v2796_v6  ;;  %v2725_v6 = vld [vmem:[%s3155_s28 + $0x64] ss:$16 sps:$4 sm:$0xff]  }
 0x79e   : > { %v2731_v9 = vld [vmem:[%s3155_s28 + $0x84] ss:$16 sps:$4 sm:$0xff]  }
 0x79f   : > { %2591 = vmatmul.mubr.msk.f32.vlgmr.msra.gmra.mrb[10].mxu1 %vm710_vm3, %v1163_v10  ;;  %v2734_v10 = vld [vmem:[%s3155_s28 + $0x8c] ss:$16 sps:$4 sm:$0xff]  }
 0x7a0   : > { %2602 = vmatpush3.xpose.msk.msra.mxu1 %vm632_vm1, %v1300_v11  ;;  %2603 = vmatprep.mubr.msk.f32.mxu1 %vm2856_vm0, %v2854_v2  ;;  %v2729_v11 = vld [vmem:[%s3155_s28 + $0x80] ss:$16 sps:$4 sm:$0xff]  }
 0x7a1   : > { %2606 = vmatprep.subr.mxu1 %v2854_v2 }
 0x7a3   : > { %2604 = vmatmul.mubr.msk.f32.vlgmr.msra.gmra.mrb[16].mxu1 %vm632_vm1, %v1298_v56  ;;  %v2732_v56 = vld [vmem:[%s3155_s28 + $0x88] ss:$16 sps:$4 sm:$0xff]  }
 0x7a4   : > { %2608 = vmatprep.mubr.msk.f32.mxu1 %vm2856_vm0, %v2854_v2 }
 0x872   : > { %v1236_v13 = vpop.f32.mrb[10].mxu1 }
 0x873   : > { %v1240_v14 = vpack.c.bf16 %v1236_v13, %v1236_v13  ;;  %v2592_v15 = vpop.f32.mrb[11].mxu1  ;;  %v2740_v13 = vld [vmem:[%s3155_s28 + $0xac] ss:$16 sps:$4 sm:$0xff]  }
 0x874   : > { %v2738_v15 = vld [vmem:[%s3155_s28 + $0xa8] ss:$16 sps:$4 sm:$0xff]  }
 0x875   : > { %2598 = vmatmul.mubr.msk.bf16.vlgmr.msra.gmra.mrb[12].mxu0 %vm632_vm1, %v1240_v14  ;;  %v2735_v14 = vld [vmem:[%s3155_s28 + $0xa0] ss:$16 sps:$4 sm:$0xff]  }
 0x876   : > { %v1371_v16 = vpop.f32.mrb[16].mxu1  ;;  %2615 = vmatprep.mubr.msk.bf16.mxu0 %vm2856_vm0, %v2854_v2  ;;  %2612 = vmatpush3.bf16.msra.mxu0 %v2703_v3 }
 0x877   : > { %v1375_v17 = vsel %vm612_vm2, %v1371_v16, -1e+30  ;;  %v2605_v18 = vpop.f32.mrb[17].mxu1  ;;  %2613 = vmatprep.subr.bf16.mxu0 %v2854_v2  ;;  %v2743_v16 = vld [vmem:[%s3155_s28 + $0xc4] ss:$16 sps:$4 sm:$0xff]  }
 0x878   : > { %v1376_v19 = vsel %vm710_vm3, %v1375_v17, -inf  ;;  %v2741_v18 = vld [vmem:[%s3155_s28 + $0xc0] ss:$16 sps:$4 sm:$0xff]  }
 0x879   : > { %1377 = vmax.xlane.f32.xlu0 %v1376_v19  ;;  %v2744_v19 = vld [vmem:[%s3155_s28 + $0xc8] ss:$16 sps:$4 sm:$0xff]  }
 0x87a   : > { %2614 = vmatpush3.bf16.msra.mxu0 %v2704_v34 }
 0x87b   : > { %1808 = vmatprep.subr.bf16.mxu0 %v2710_v51  ;;  %v2767_v51 = vld [vmem:[%s3172_s14 + $0x18] sm:$0xff]  }
 0x88f   : > { %1387 = vrot.lane.b32.xlu0 %v3039_v62, %s2859_s22 }
 0x906   : > { %v1378_v20 = vpop.xlane.xlu0 %1377 }
 0x907   : > { %v1379_v21 = vsub.f32 %v1375_v17, %v1378_v20  ;;  %v2746_v17 = vld [vmem:[%s3155_s28 + $0xcc] ss:$16 sps:$4 sm:$0xff]   ;;  %v2749_v20 = vld [vmem:[%s3155_s28 + $0xe4] ss:$16 sps:$4 sm:$0xff]  }
 0x909   : > { %v1380_v22 = vmul.f32 1.442695, %v1379_v21  ;;  %v2752_v21 = vld [vmem:[%s3155_s28 + $0xec] ss:$16 sps:$4 sm:$0xff]  }
 0x90a   : > { %v1388_v23 = vpop.permute.xlu0 %1387 }
 0x90b   : > { %2799 = vpow2.f32 %v1380_v22  ;;  %2607 = vmatpush3.msra.mxu1 %v1388_v23  ;;  %v2747_v22 = vld [vmem:[%s3155_s28 + $0xe0] ss:$16 sps:$4 sm:$0xff]   ;;  %v2750_v23 = vld [vmem:[%s3155_s28 + $0xe8] ss:$16 sps:$4 sm:$0xff]  }
 0x915   : > { %v2800_v24 = vpop.eup %2799 }
 0x916   : > { %v1382_v25 = vsel %vm710_vm3, %v2800_v24, 0.0 }
 0x917   : > { %1383 = vadd.xlane.f32.xlu1 %v1382_v25 }
 0x948   : > { %v1290_v27 = vpop.f32.mrb[12].mxu0 }
 0x949   : > { %v1296_v28 = vadd.f32 %v1290_v27, %v3103_v52  ;;  %v2599_v29 = vpop.f32.mrb[13].mxu0  ;;  %v2711_v52 = vld [vmem:[%s3155_s28 + $0x20] ss:$16 sps:$4 sm:$0xff]   ;;  %v1539_v27 = vsub.s32 3, %v2996_v36 }
 0x94a   : > { %v1293_v62 = vpop.f32.mrb[14].mxu0 }
 0x94b   : > { %v2600_v30 = vpop.f32.mrb[15].mxu0  ;;  %v1540_v29 = vrot.slane %v3007_v38, %v1539_v27 }
 0x9a4   : > { %v1384_v31 = vpop.xlane.xlu1 %1383 }
 0x9a5   : > { %2801 = vrcp.f32 %v1384_v31 }
 0x9af   : > { %v2802_v32 = vpop.eup %2801 }
 0x9b0   : > { %v1386_v33 = vmul.f32 %v2802_v32, %v2800_v24 }
 0x9b2   : > { %2609 = vmatmul.mubr.msk.f32.vlgmr.msra.gmra.mrb[18].mxu1 %vm710_vm3, %v1386_v33 }
 0x9b3   : > { %1799 = vmatprep.mubr.bf16.mxu1 %v2855_v26 }
 0xa85   : > { %v1459_v35 = vpop.f32.mrb[18].mxu1 }
 0xa86   : > { %v1463_v40 = vpack.c.bf16 %v1459_v35, %v1459_v35  ;;  %v2610_v2 = vpop.f32.mrb[19].mxu1  ;;  %v2753_v35 = vld [vmem:[%s3172_s14 + $0x40] sm:$0xff]  }
 0xa87   : > { %v2755_v2 = vld [vmem:[%s3172_s14] sm:$0xff]  }
 0xa88   : > { %2616 = vmatmul.mubr.msk.bf16.vlgmr.msra.gmra.mrb[16].mxu0 %vm632_vm1, %v1463_v40  ;;  %v2754_v40 = vld [vmem:[%s3172_s14 + $0xc0] sm:$0xff]  }
 0xa89   : > { %1840 = vmatprep.mubr.bf16.mxu0 %v2855_v26  ;;  %v2707_v26 = vld [vmem:[%s3155_s28 + $0x4] ss:$16 sps:$4 sm:$0xff]   ;;  %1809 = vmatpush1.bf16.msra.mxu0 %v2708_v50  ;;  %v2766_v50 = vld [vmem:[%s3172_s14 + $0xd8] sm:$0xff]  }
 0xa8a   : > { %1767 = vmatprep.subr.bf16.mxu1 %v2707_v26  ;;  %1810 = vmatprep.subr.bf16.mxu0 %v2716_v55  ;;  %v2765_v26 = vld [vmem:[%s3172_s14 + $0x58] sm:$0xff]   ;;  %v2771_v55 = vld [vmem:[%s3172_s14 + $0x20] sm:$0xff]  }
 0xa8d   : > { %1811 = vmatpush1.bf16.msra.mxu0 %v2714_v54  ;;  %v2770_v54 = vld [vmem:[%s3172_s14 + $0xe0] sm:$0xff]  }
 0xa8e   : > { %1812 = vmatprep.subr.bf16.mxu0 %v2722_v60  ;;  %v2775_v60 = vld [vmem:[%s3172_s14 + $0x28] sm:$0xff]  }
 0xa91   : > { %1813 = vmatpush1.bf16.msra.mxu0 %v2720_v59  ;;  %v2774_v59 = vld [vmem:[%s3172_s14 + $0xe8] sm:$0xff]  }
 0xa92   : > { %1814 = vmatprep.subr.bf16.mxu0 %v2728_v7  ;;  %v2781_v7 = vld [vmem:[%s3172_s14 + $0x78] sm:$0xff]  }
 0xa95   : > { %1815 = vmatpush1.bf16.msra.mxu0 %v2726_v61  ;;  %v2783_v61 = vld [vmem:[%s3172_s14 + $0x38] sm:$0xff]  }
 0xa96   : > { %1816 = vmatprep.subr.bf16.mxu0 %v2734_v10  ;;  %v1585_v10 = vld [vmem:[%s1584_s19] sm:$0xf] }
 0xa99   : > { %1817 = vmatpush1.bf16.msra.mxu0 %v2732_v56  ;;  %v1598_v56 = vrot.slane %v1585_v10, %v3025_v48 }
 0xa9a   : > { %1818 = vmatprep.subr.bf16.mxu0 %v2740_v13  ;;  %v1602_v13 = vrot.slane %v1585_v10, %v1539_v27 }
 0xa9d   : > { %1819 = vmatpush1.bf16.msra.mxu0 %v2738_v15 }
 0xa9e   : > { %1820 = vmatprep.subr.bf16.mxu0 %v2746_v17 }
 0xaa1   : > { %1821 = vmatpush1.bf16.msra.mxu0 %v2744_v19 }
 0xaa2   : > { %1822 = vmatprep.subr.bf16.mxu0 %v2752_v21 }
 0xaa5   : > { %1823 = vmatpush1.bf16.msra.mxu0 %v2750_v23 }
 0xaa6   : > { %2505 = vmatprep.subr.bf16.mxu0 %v2754_v40 }
 0xb5b   : > { %v1513_v41 = vpop.f32.mrb[16].mxu0 }
 0xb5c   : > { %v1519_v42 = vadd.f32 %v1513_v41, %v1296_v28  ;;  %v2617_v43 = vpop.f32.mrb[17].mxu0  ;;  %v1544_v28 = vsub.s32 4, %v2996_v36  ;;  %v2756_v41 = vld [vmem:[%s3172_s14 + $0x80] sm:$0xff]  }
 0xb5d   : > { %v1516_v45 = vpop.f32.mrb[18].mxu0  ;;  %v2759_v43 = vld [vmem:[%s3172_s14 + $0x8] sm:$0xff]  }
 0xb5e   : > { %v1520_v46 = vadd.f32 %v1519_v42, %v2948_v1  ;;  %v2618_v47 = vpop.f32.mrb[19].mxu0  ;;  %v2705_v1 = vld [vmem:[%s3155_s28] ss:$16 sps:$4 sm:$0xff]   ;;  %v1545_v31 = vrot.slane %v3007_v38, %v1544_v28  ;;  %v2757_v38 = vld [vmem:[%s3172_s14 + $0x48] sm:$0xff]  }
 0xb5f   : > { %1768 = vmatpush1.bf16.msra.mxu1 %v2705_v1  ;;  %v2758_v42 = vld [vmem:[%s3172_s14 + $0xc8] sm:$0xff]   ;;  %v2761_v45 = vld [vmem:[%s3172_s14 + $0x50] sm:$0xff]  }
 0xb60   : > { %v3148_v49 = vadd.f32 %v1524_v44, %v1520_v46  ;;  %1769 = vmatprep.subr.bf16.mxu1 %v2713_v53  ;;  %v2760_v44 = vld [vmem:[%s3172_s14 + $0x88] sm:$0xff]   ;;  %v2762_v46 = vld [vmem:[%s3172_s14 + $0xd0] sm:$0xff]   ;;  %v2769_v53 = vld [vmem:[%s3172_s14 + $0x60] sm:$0xff]  }
 0xb61   : > { %v2763_v47 = vld [vmem:[%s3172_s14 + $0x10] sm:$0xff]  }
 0xb62   : > { %1526 = vadd.xlane.f32.xlu1 %v3148_v49  ;;  %v2764_v1 = vld [vmem:[%s3172_s14 + $0x90] sm:$0xff]  }
 0xb63   : > { %1770 = vmatpush1.bf16.msra.mxu1 %v2711_v52  ;;  %v2768_v52 = vld [vmem:[%s3172_s14 + $0x98] sm:$0xff]  }
 0xb64   : > { %1771 = vmatprep.subr.bf16.mxu1 %v2719_v58  ;;  %v2773_v58 = vld [vmem:[%s3172_s14 + $0x68] sm:$0xff]  }
 0xb67   : > { %1772 = vmatpush1.bf16.msra.mxu1 %v2717_v57  ;;  %v2772_v57 = vld [vmem:[%s3172_s14 + $0xa0] sm:$0xff]  }
 0xb68   : > { %1773 = vmatprep.subr.bf16.mxu1 %v2725_v6  ;;  %v2780_v6 = vld [vmem:[%s3172_s14 + $0xb0] sm:$0xff]  }
 0xb6b   : > { %1774 = vmatpush1.bf16.msra.mxu1 %v2723_v8  ;;  %v2782_v8 = vld [vmem:[%s3172_s14 + $0xf8] sm:$0xff]  }
 0xb6c   : > { %1775 = vmatprep.subr.bf16.mxu1 %v2731_v9  ;;  %v2784_v9 = vld [vmem:[%s3172_s14 + $0xb8] sm:$0xff]  }
 0xb6f   : > { %1776 = vmatpush1.bf16.msra.mxu1 %v2729_v11  ;;  %v1590_v11 = vrot.slane %v1585_v10, %v3004_v37 }
 0xb70   : > { %1777 = vmatprep.subr.bf16.mxu1 %v2737_v12  ;;  %v1594_v12 = vrot.slane %v1585_v10, %v3010_v39 }
 0xb73   : > { %1778 = vmatpush1.bf16.msra.mxu1 %v2735_v14 }
 0xb74   : > { %1779 = vmatprep.subr.bf16.mxu1 %v2743_v16 }
 0xb77   : > { %1780 = vmatpush1.bf16.msra.mxu1 %v2741_v18 }
 0xb78   : > { %1781 = vmatprep.subr.bf16.mxu1 %v2749_v20 }
 0xb7b   : > { %1782 = vmatpush1.bf16.msra.mxu1 %v2747_v22 }
 0xb7c   : > { %2483 = vmatprep.subr.bf16.mxu1 %v2753_v35 }
 0xbef   : > { %v1527_v63 = vpop.xlane.xlu1 %1526 }
 0xbf0   : > { %v1528_v0 = vmul.f32 0.0078125, %v1527_v63  ;;  %v2776_v63 = vld [vmem:[%s3172_s14 + $0xa8] sm:$0xff]  }
 0xbf2   : > { %v1529_v4 = vsub.f32 %v3148_v49, %v1528_v0  ;;  %v2777_v0 = vld [vmem:[%s3172_s14 + $0x70] sm:$0xff]  }
 0xbf4   : > { %v1530_v5 = vmul.f32 %v1529_v4, %v1529_v4 }
 0xbf6   : > { %1531 = vadd.xlane.f32.xlu1 %v1530_v5  ;;  %v2779_v5 = vld [vmem:[%s3172_s14 + $0x30] sm:$0xff]  }
 0xc83   : > { %v1532_v24 = vpop.xlane.xlu1 %1531 }
 0xc84   : > { %v1533_v25 = vmul.f32 0.0078125, %v1532_v24 }
 0xc86   : > { %v1534_v3 = vadd.f32 1e-06, %v1533_v25 }
 0xc88   : > { %2803 = vrsqrt.f32 %v1534_v3 }
 0xc92   : > { %v2804_v62 = vpop.eup %2803 }
 0xc93   : > { %v1536_v30 = vmul.f32 %v2804_v62, %v1529_v4  ;;  %v2778_v4 = vld [vmem:[%s3172_s14 + $0xf0] sm:$0xff]  }
 0xc95   : > { %v1541_v32 = vmul.f32 %v1540_v29, %v1536_v30 }
 0xc97   : > { %v1546_v33 = vadd.f32 %v1545_v31, %v1541_v32 }
 0xc99   : > { %v1547_v34 = vpack.c.bf16 %v1546_v33, %v1546_v33 }
 0xc9b   : > { %1800 = vmatmul.mubr.bf16.vlgmr.msra.gmra.mrb[20].mxu1 %v1547_v34  ;;  %1841 = vmatmul.mubr.bf16.vlgmr.msra.gmra.mrb[20].mxu0 %v1547_v34 }
 0xc9c   : > { %2484 = vmatpush3.bf16.msra.mxu1 %v2755_v2  ;;  %2506 = vmatpush3.bf16.msra.mxu0 %v2756_v41 }
 0xc9d   : > { %2485 = vmatprep.subr.bf16.mxu1 %v2757_v38  ;;  %2507 = vmatprep.subr.bf16.mxu0 %v2758_v42 }
 0xca0   : > { %2486 = vmatpush3.bf16.msra.mxu1 %v2759_v43  ;;  %2508 = vmatpush3.bf16.msra.mxu0 %v2760_v44 }
 0xca1   : > { %2487 = vmatprep.subr.bf16.mxu1 %v2761_v45  ;;  %2509 = vmatprep.subr.bf16.mxu0 %v2762_v46 }
 0xca4   : > { %2488 = vmatpush3.bf16.msra.mxu1 %v2763_v47  ;;  %2510 = vmatpush3.bf16.msra.mxu0 %v2764_v1 }
 0xca5   : > { %2489 = vmatprep.subr.bf16.mxu1 %v2765_v26  ;;  %2511 = vmatprep.subr.bf16.mxu0 %v2766_v50 }
 0xca8   : > { %2490 = vmatpush3.bf16.msra.mxu1 %v2767_v51  ;;  %2512 = vmatpush3.bf16.msra.mxu0 %v2768_v52 }
 0xca9   : > { %2491 = vmatprep.subr.bf16.mxu1 %v2769_v53  ;;  %2513 = vmatprep.subr.bf16.mxu0 %v2770_v54 }
 0xcac   : > { %2492 = vmatpush3.bf16.msra.mxu1 %v2771_v55  ;;  %2514 = vmatpush3.bf16.msra.mxu0 %v2772_v57 }
 0xcad   : > { %2493 = vmatprep.subr.bf16.mxu1 %v2773_v58  ;;  %2515 = vmatprep.subr.bf16.mxu0 %v2774_v59 }
 0xcb0   : > { %2494 = vmatpush3.bf16.msra.mxu1 %v2775_v60  ;;  %2516 = vmatpush3.bf16.msra.mxu0 %v2776_v63 }
 0xcb1   : > { %2495 = vmatprep.subr.bf16.mxu1 %v2777_v0  ;;  %2517 = vmatprep.subr.bf16.mxu0 %v2778_v4 }
 0xcb4   : > { %2496 = vmatpush3.bf16.msra.mxu1 %v2779_v5  ;;  %2518 = vmatpush3.bf16.msra.mxu0 %v2780_v6 }
 0xcb5   : > { %2497 = vmatprep.subr.bf16.mxu1 %v2781_v7  ;;  %2519 = vmatprep.subr.bf16.mxu0 %v2782_v8 }
 0xcb8   : > { %2498 = vmatpush3.bf16.msra.mxu1 %v2783_v61  ;;  %2520 = vmatpush3.bf16.msra.mxu0 %v2784_v9  ;;  %v2230_v61 = vsub.s32 5, %v2996_v36 }
 0xd6e   : > { %v1801_v14 = vpop.f32.mrb[20].mxu1  ;;  %v1842_v15 = vpop.f32.mrb[20].mxu0 }
 0xd6f   : > { %v1802_v16 = vadd.f32 %v1801_v14, %v1590_v11  ;;  %v1843_v17 = vadd.f32 %v1842_v15, %v1598_v56  ;;  %v1803_v18 = vpop.f32.mrb[21].mxu1  ;;  %v1844_v19 = vpop.f32.mrb[21].mxu0 }
 0xd70   : > { %v1804_v20 = vadd.f32 %v1803_v18, %v1594_v12  ;;  %v1845_v21 = vadd.f32 %v1844_v19, %v1602_v13  ;;  %v1805_v22 = vpop.f32.mrb[22].mxu1  ;;  %v1846_v23 = vpop.f32.mrb[22].mxu0 }
 0xd71   : > { %v1853_v24 = vmul.f32 0.044715, %v1802_v16  ;;  %v1855_v25 = vmul.f32 0.044715, %v1843_v17  ;;  %v1806_v37 = vpop.f32.mrb[23].mxu1  ;;  %v1847_v3 = vpop.f32.mrb[23].mxu0 }
 0xd72   : > { %v1854_v48 = vmul.f32 0.044715, %v1804_v20  ;;  %v1856_v28 = vmul.f32 0.044715, %v1845_v21  ;;  %v1849_v46 = vmul.f32 0.5, %v1802_v16  ;;  %v1850_v26 = vmul.f32 0.5, %v1804_v20 }
 0xd73   : > { %v1857_v39 = vmul.f32 %v1853_v24, %v1802_v16  ;;  %v1859_v29 = vmul.f32 %v1855_v25, %v1843_v17  ;;  %v1852_v52 = vmul.f32 0.5, %v1845_v21  ;;  %v1851_v57 = vmul.f32 0.5, %v1843_v17 }
 0xd74   : > { %v1858_v62 = vmul.f32 %v1854_v48, %v1804_v20  ;;  %v1860_v27 = vmul.f32 %v1856_v28, %v1845_v21 }
 0xd75   : > { %v1861_v30 = vmul.f32 %v1857_v39, %v1802_v16  ;;  %v1863_v31 = vmul.f32 %v1859_v29, %v1843_v17 }
 0xd76   : > { %v1862_v32 = vmul.f32 %v1858_v62, %v1804_v20  ;;  %v1864_v33 = vmul.f32 %v1860_v27, %v1845_v21 }
 0xd77   : > { %v1865_v34 = vadd.f32 %v1861_v30, %v1802_v16  ;;  %v1867_v35 = vadd.f32 %v1863_v31, %v1843_v17  ;;  %v2813_v16 = vld [vmem:[%s3001_s26] sm:$0x3f] }
 0xd78   : > { %v1866_v40 = vadd.f32 %v1862_v32, %v1804_v20  ;;  %v1868_v2 = vadd.f32 %v1864_v33, %v1845_v21  ;;  %v2231_v17 = vrot.slane %v2813_v16, %v2230_v61 }
 0xd79   : > { %v1869_v41 = vmul.f32 0.7978846, %v1865_v34  ;;  %v1871_v43 = vmul.f32 0.7978846, %v1867_v35 }
 0xd7a   : > { %v1870_v38 = vmul.f32 0.7978846, %v1866_v40  ;;  %v1872_v42 = vmul.f32 0.7978846, %v1868_v2 }
 0xd7b   : > { %2805 = vtanh.f32 %v1869_v41 }
 0xd7c   : > { %2807 = vtanh.f32 %v1870_v38 }
 0xd7d   : > { %2809 = vtanh.f32 %v1872_v42 }
 0xd7e   : > { %2811 = vtanh.f32 %v1871_v43 }
 0xd85   : > { %v2806_v44 = vpop.eup %2805 }
 0xd86   : > { %v2808_v45 = vpop.eup %2807  ;;  %v1877_v47 = vadd.f32 1.0, %v2806_v44 }
 0xd87   : > { %v2810_v1 = vpop.eup %2809  ;;  %v1878_v50 = vadd.f32 1.0, %v2808_v45 }
 0xd88   : > { %v2812_v51 = vpop.eup %2811  ;;  %v1880_v53 = vadd.f32 1.0, %v2810_v1  ;;  %v1881_v54 = vmul.f32 %v1877_v47, %v1849_v46 }
 0xd89   : > { %v1882_v55 = vmul.f32 %v1878_v50, %v1850_v26  ;;  %v1879_v58 = vadd.f32 1.0, %v2812_v51 }
 0xd8a   : > { %v1884_v59 = vmul.f32 %v1880_v53, %v1852_v52  ;;  %v1885_v4 = vpack.c.bf16 %v1881_v54, %v1881_v54 }
 0xd8b   : > { %v1886_v60 = vpack.c.bf16 %v1882_v55, %v1882_v55  ;;  %v1883_v63 = vmul.f32 %v1879_v58, %v1851_v57 }
 0xd8c   : > { %v1888_v0 = vpack.c.bf16 %v1884_v59, %v1884_v59 }
 0xd8d   : > { %2179 = vmatprep.mubr.bf16.mxu1 %v1886_v60  ;;  %v1887_v5 = vpack.c.bf16 %v1883_v63, %v1883_v63 }
 0xd8e   : > { %2219 = vmatprep.mubr.bf16.mxu0 %v1888_v0  ;;  %2180 = vmatmul.mubr.bf16.vlgmr.msra.gmra.mrb[24].mxu1 %v1885_v4 }
 0xd8f   : > { %2220 = vmatmul.mubr.bf16.vlgmr.msra.gmra.mrb[24].mxu0 %v1887_v5 }
 0xe61   : > { %v2499_v6 = vpop.f32.mrb[24].mxu1 }
 0xe62   : > { %v2521_v7 = vpop.f32.mrb[24].mxu0  ;;  %v2500_v8 = vpop.f32.mrb[25].mxu1 }
 0xe63   : > { %v2501_v9 = vadd.f32 %v2500_v8, %v2499_v6  ;;  %v2522_v10 = vpop.f32.mrb[25].mxu0  ;;  %v2502_v11 = vpop.f32.mrb[26].mxu1 }
 0xe64   : > { %v2523_v56 = vadd.f32 %v2522_v10, %v2521_v7  ;;  %v2524_v12 = vpop.f32.mrb[26].mxu0  ;;  %v2503_v13 = vpop.f32.mrb[27].mxu1 }
 0xe65   : > { %v2525_v14 = vpop.f32.mrb[27].mxu0 }
 0xe66   : > { %v2222_v15 = vadd.f32 %v2523_v56, %v2501_v9 }
 0xe68   : > { %v2227_v18 = vadd.f32 %v2222_v15, %v3148_v49 }
 0xe6a   : > { %v2232_v19 = vadd.f32 %v2231_v17, %v2227_v18 }
 0xe6c   : > { %2233 = vst [vmem:[%s2943_s18] sm:$0xff] %v2232_v19 }
 0xe6d PF: > { %s18_s9 = sadd.s32 1, %s2852_s9   ;;  %s3270_s27 = smov %s2844_s29 }
 0xe6e   : > { %p15_p7 = scmp.ge.s32.totalorder %s18_s9, 6   ;;  %s3271_s28 = smov %s2848_s30 }
 0xe6f   : > { %s3272_s29 = smov %s3275_s10  ;;  %s3273_s30 = smov %s3279_s11 }
 0xe70   :  { %17 = sbr.rel (!%p15_p7) target bundleno = 3 (0x3), region = 93 }

</bundles_post_ra>
